<compile_context>
chip_gen: v7x
topology: tpu7x:2x2x1
jax: 0.10.0
libtpu: 0.0.40
codegen_flags: <defaults>
</compile_context>

<pallas_src>
import jax
import jax.numpy as jnp
from jax import lax
from jax.experimental import pallas as pl
from jax.experimental.pallas import tpu as pltpu


# ---------------------------------------------------------------------------
# Pallas kernels
# ---------------------------------------------------------------------------
def _conv_pool_kernel(x_ref, w_ref, b_ref, o_ref):
    # x: (4, TM, K) bf16 -- the 4 taps of each 2x2 pooling window (im2col rows)
    # w: (K, 128) bf16   -- conv weight, Cout zero-padded to 128 lanes
    # b: (1, 128)  f32   -- bias, zero-padded
    # o: (TM, 128) bf16  -- pooled, ReLU'd conv output (lane-dense)
    t, tm, k = x_ref.shape
    x = x_ref[...].reshape(t * tm, k)                 # stack taps: one long M pass
    y = jnp.dot(x, w_ref[...], preferred_element_type=jnp.float32)
    y = y.reshape(t, tm, 128)
    m = jnp.max(y, axis=0)                            # 2x2 max-pool (VPU)
    # pool(relu(conv + b)) == relu(pool(conv) + b)  (per-channel b, relu monotone)
    o_ref[...] = jnp.maximum(m + b_ref[...], 0.0).astype(o_ref.dtype)


def _mlp_kernel(x_ref, w1_ref, b1_ref, w2_ref, b2_ref, w3_ref, b3_ref, o_ref):
    # Fused fc1 -> ReLU -> fc2 -> ReLU -> fc3; weights resident in VMEM.
    # Matmul operands bf16, accumulation + epilogue in f32.
    h = jnp.dot(x_ref[...], w1_ref[...], preferred_element_type=jnp.float32)
    h = jnp.maximum(h + b1_ref[...], 0.0)
    h = jnp.dot(h.astype(jnp.bfloat16), w2_ref[...],
                preferred_element_type=jnp.float32)
    h = jnp.maximum(h + b2_ref[...], 0.0)
    h = jnp.dot(h.astype(jnp.bfloat16), w3_ref[...],
                preferred_element_type=jnp.float32)
    o_ref[...] = h + b3_ref[...]


# ---------------------------------------------------------------------------
# Tile selection (sublane-rounded, generation-aware)
# ---------------------------------------------------------------------------
def _round_up(x, n):
    return -(-x // n) * n


def _pick_tile(m, max_tile, sub=16):
    """Pick (tile_rows, padded_rows):
       * tile is a multiple of `sub` (16-row sublane pack for bf16 outputs),
       * tile <= max_tile (2048 fits v5e's 16 MiB scoped VMEM and v7x's 64 MiB;
         pass max_tile=4096 on v6e's 128 MiB VMEM for large batch),
       * >= 2 grid programs whenever there are >= 2*sub rows so both of v7x's
         TensorCores get work (harmless on single-TC v5e/v6e)."""
    m_sub = _round_up(m, sub)
    n_min = 2 if m_sub >= 2 * sub else 1
    n = max(-(-m_sub // max_tile), n_min)
    tile = _round_up(-(-m_sub // n), sub)
    m_pad = _round_up(m_sub, tile)
    return tile, m_pad


# ---------------------------------------------------------------------------
# Pallas wrappers
# ---------------------------------------------------------------------------
def conv_relu_pool_pallas(taps, wmat, bias, *, max_tile=2048):
    """Fused conv (im2col GEMM) + bias + ReLU + 2x2 max-pool.

    taps: (4, M, K) bf16 with M = B * (H_out/2) * (W_out/2) pooled positions,
          K the REAL contraction size (75 / 150, no HBM padding).
    Returns (M, 128) bf16 (real channels first, remaining lanes exactly zero)."""
    _, m, k = taps.shape
    tm, m_pad = _pick_tile(m, max_tile)
    if m_pad != m:
        taps = jnp.pad(taps, ((0, 0), (0, m_pad - m), (0, 0)))
    n = m_pad // tm
    if n >= 3:  # deepen pipelining only when the grid is deep enough to use it
        taps_spec = pl.BlockSpec((4, tm, k), lambda i: (0, i, 0),
                                 pipeline_mode=pl.Buffered(3))
    else:
        taps_spec = pl.BlockSpec((4, tm, k), lambda i: (0, i, 0))
    out = pl.pallas_call(
        _conv_pool_kernel,
        out_shape=jax.ShapeDtypeStruct((m_pad, 128), jnp.bfloat16),
        grid=(n,),
        in_specs=[
            taps_spec,
            pl.BlockSpec((k, 128), lambda i: (0, 0)),
            pl.BlockSpec((1, 128), lambda i: (0, 0)),
        ],
        out_specs=pl.BlockSpec((tm, 128), lambda i: (i, 0)),
        compiler_params=pltpu.CompilerParams(
            dimension_semantics=("parallel",)),
    )(taps, wmat, bias)
    return out[:m]


def mlp_pallas(x, w1, b1, w2, b2, w3, b3, *, max_tile=512):
    """Fused 3-layer MLP head; x: (B, 400) bf16, returns (B, 128) f32."""
    b, k = x.shape
    tb, b_pad = _pick_tile(b, max_tile)
    if b_pad != b:
        x = jnp.pad(x, ((0, b_pad - b), (0, 0)))
    n = b_pad // tb
    if n >= 3:
        x_spec = pl.BlockSpec((tb, k), lambda i: (i, 0),
                              pipeline_mode=pl.Buffered(3))
    else:
        x_spec = pl.BlockSpec((tb, k), lambda i: (i, 0))
    out = pl.pallas_call(
        _mlp_kernel,
        out_shape=jax.ShapeDtypeStruct((b_pad, 128), jnp.float32),
        grid=(n,),
        in_specs=[
            x_spec,
            pl.BlockSpec((k, 128), lambda i: (0, 0)),
            pl.BlockSpec((1, 128), lambda i: (0, 0)),
            pl.BlockSpec((128, 128), lambda i: (0, 0)),
            pl.BlockSpec((1, 128), lambda i: (0, 0)),
            pl.BlockSpec((128, 128), lambda i: (0, 0)),
            pl.BlockSpec((1, 128), lambda i: (0, 0)),
        ],
        out_specs=pl.BlockSpec((tb, 128), lambda i: (i, 0)),
        compiler_params=pltpu.CompilerParams(
            dimension_semantics=("parallel",)),
    )(x, w1, b1, w2, b2, w3, b3)
    return out[:b]


# ---------------------------------------------------------------------------
# Host-side glue: im2col + pooling-tap arrangement (pure XLA, no Pallas)
# ---------------------------------------------------------------------------
def _im2col_pool_taps(x_nhwc, k):
    """Extract kxk 'VALID' conv patches (one fused XLA gather) and arrange them
    into the 4 taps of each 2x2 pooling window: (4, B*OH/2*OW/2, Cin*k*k).
    Patch feature order is (c, kh, kw), matching PyTorch's
    weight.reshape(Cout, Cin*KH*KW) flattening.  K is left UNPADDED."""
    p = lax.conv_general_dilated_patches(
        x_nhwc, filter_shape=(k, k), window_strides=(1, 1), padding="VALID",
        dimension_numbers=("NHWC", "HWIO", "NHWC"))
    bsz, oh, ow, kk = p.shape
    h2, w2 = oh // 2, ow // 2
    p = p.reshape(bsz, h2, 2, w2, 2, kk).transpose(2, 4, 0, 1, 3, 5)
    p = p.reshape(4, bsz * h2 * w2, kk)
    return p.astype(jnp.bfloat16)


# ---------------------------------------------------------------------------
# Parameters (deterministic, PyTorch-default-style uniform init) + one-time
# repack into lane-padded, bf16, Pallas-ready matrices.
# ---------------------------------------------------------------------------
def init_params(key):
    ks = jax.random.split(key, 10)

    def u(k, shape, fan_in):
        bound = 1.0 / jnp.sqrt(jnp.float32(fan_in))
        return jax.random.uniform(k, shape, jnp.float32, -bound, bound)

    return {
        "conv1_w": u(ks[0], (6, 3, 5, 5), 3 * 5 * 5),
        "conv1_b": u(ks[1], (6,), 3 * 5 * 5),
        "conv2_w": u(ks[2], (16, 6, 5, 5), 6 * 5 * 5),
        "conv2_b": u(ks[3], (16,), 6 * 5 * 5),
        "fc1_w": u(ks[4], (120, 400), 400),
        "fc1_b": u(ks[5], (120,), 400),
        "fc2_w": u(ks[6], (84, 120), 120),
        "fc2_b": u(ks[7], (84,), 120),
        "fc3_w": u(ks[8], (10, 84), 84),
        "fc3_b": u(ks[9], (10,), 84),
    }


def prepare_params(p):
    """One-time repack of PyTorch-layout params (done once, outside forward)."""
    bf16 = jnp.bfloat16

    def pad_cols(m, cols):
        return jnp.pad(m, ((0, 0), (0, cols - m.shape[1])))

    def padb(b, n):
        return jnp.pad(b, (0, n - b.shape[0])).reshape(1, n).astype(jnp.float32)

    # Conv weights: (Cout, Cin, k, k) -> (Cin*k*k, Cout).  K stays at its real
    # size (75 / 150) so the big taps stream is never K-padded in HBM; only
    # the tiny resident weight gets its Cout zero-padded to 128 lanes.
    c1 = pad_cols(p["conv1_w"].reshape(6, 75).T, 128).astype(bf16)     # (75, 128)
    c2 = pad_cols(p["conv2_w"].reshape(16, 150).T, 128).astype(bf16)   # (150, 128)

    # fc1 consumes the pooled conv2 output flattened in (h, w, c=16) order
    # (vs PyTorch's (c, h, w) flatten of x.view(-1, 400)) -> permute fc1's
    # input axis once at init.  K stays at the real 400 (compact channels);
    # out 120 -> 128 lanes.
    w1 = p["fc1_w"].reshape(120, 16, 5, 5).transpose(2, 3, 1, 0)   # (5,5,16,120)
    w1 = pad_cols(w1.reshape(400, 120), 128).astype(bf16)          # (400, 128)

    w2 = jnp.pad(p["fc2_w"].T, ((0, 8), (0, 44))).astype(bf16)     # (120,84)->(128,128)
    w3 = jnp.pad(p["fc3_w"].T, ((0, 44), (0, 118))).astype(bf16)   # (84,10)->(128,128)

    return {
        "conv1_w": c1, "conv1_b": padb(p["conv1_b"], 128),
        "conv2_w": c2, "conv2_b": padb(p["conv2_b"], 128),
        "fc1_w": w1, "fc1_b": padb(p["fc1_b"], 128),
        "fc2_w": w2, "fc2_b": padb(p["fc2_b"], 128),
        "fc3_w": w3, "fc3_b": padb(p["fc3_b"], 128),
    }


# ---------------------------------------------------------------------------
# Forward pass (matches Net.forward semantics)
# ---------------------------------------------------------------------------
@jax.jit
def net_forward(pp, x):
    # x: (B, 3, 32, 32) f32, NCHW (PyTorch convention)
    bsz = x.shape[0]
    xh = jnp.transpose(x, (0, 2, 3, 1)).astype(jnp.bfloat16)       # NHWC, bf16

    # conv1(3->6, k=5) + ReLU + 2x2 pool, fused                    -> (B*196, 128)
    t1 = _im2col_pool_taps(xh, 5)                                  # (4, B*196, 75)
    p1 = conv_relu_pool_pallas(t1, pp["conv1_w"], pp["conv1_b"])
    p1 = p1.reshape(bsz, 14, 14, 128)[..., :6]                     # real channels

    # conv2(6->16, k=5) + ReLU + 2x2 pool, fused                   -> (B*25, 128)
    t2 = _im2col_pool_taps(p1, 5)                                  # (4, B*25, 150)
    p2 = conv_relu_pool_pallas(t2, pp["conv2_w"], pp["conv2_b"])

    # Compact to the 16 real channels, flatten in (h, w, c) order (fc1's weight
    # was permuted at init so this equals PyTorch's x.view(-1, 16*5*5) path).
    feat = p2.reshape(bsz, 5, 5, 128)[..., :16].reshape(bsz, 400)  # (B, 400) bf16

    # fc1 -> ReLU -> fc2 -> ReLU -> fc3, fused in one launch.
    out = mlp_pallas(feat, pp["fc1_w"], pp["fc1_b"],
                     pp["fc2_w"], pp["fc2_b"],
                     pp["fc3_w"], pp["fc3_b"])
    return out[:, :10]                                             # (B, 10) f32


if __name__ == "__main__":
    key = jax.random.PRNGKey(0)
    pkey, xkey = jax.random.split(key)
    params = init_params(pkey)
    pallas_params = prepare_params(params)       # one-time weight repack
    # Spatial size 32 is implied by the 16*5*5 flatten in the PyTorch module.
    x = jax.random.normal(xkey, (2, 3, 32, 32), jnp.float32)
    out = jax.block_until_ready(net_forward(pallas_params, x))
    assert out.shape == (2, 10) and out.dtype == jnp.float32
    print("KERNEL_OK")
</pallas_src>

<mosaic_0001>
module attributes {stable_mosaic.version = 11 : i64} {
  func.func @_conv_pool_kernel(%arg0: i32, %arg1: memref<4x208x75xbf16, #tpu.memory_space<vmem>>, %arg2: memref<75x128xbf16, #tpu.memory_space<vmem>>, %arg3: memref<1x128xf32, #tpu.memory_space<vmem>>, %arg4: memref<208x128xbf16, #tpu.memory_space<vmem>>) attributes {dimension_semantics = [#tpu.dimension_semantics<parallel>], iteration_bounds = array<i64: 2>, scalar_prefetch = 0 : i64, scratch_operands = 0 : i64, tpu.core_type = #tpu.core_type<tc>, window_params = [{transform_indices = @transform_0, window_bounds = array<i64: 4, 208, 75>}, {pipeline_mode = #tpu.pipeline_mode<synchronous>, transform_indices = @transform_1, window_bounds = array<i64: 75, 128>}, {pipeline_mode = #tpu.pipeline_mode<synchronous>, transform_indices = @transform_2, window_bounds = array<i64: 1, 128>}, {transform_indices = @transform_3, window_bounds = array<i64: 208, 128>}]} {
    %c0 = arith.constant 0 : index
    %c0_0 = arith.constant 0 : index
    %c0_1 = arith.constant 0 : index
    %0 = vector.load %arg1[%c0, %c0_0, %c0_1] : memref<4x208x75xbf16, #tpu.memory_space<vmem>>, vector<4x208x75xbf16>
    %1 = vector.shape_cast %0 : vector<4x208x75xbf16> to vector<832x75xbf16>
    %c0_2 = arith.constant 0 : index
    %c0_3 = arith.constant 0 : index
    %2 = vector.load %arg2[%c0_2, %c0_3] : memref<75x128xbf16, #tpu.memory_space<vmem>>, vector<75x128xbf16>
    %cst = arith.constant dense<0.000000e+00> : vector<832x128xf32>
    %3 = tpu.matmul %1, %2, %cst {dimension_numbers = #tpu.dot_dimension_numbers<[1], [0], [0], [1], [0, 0, 1, 1], [], []>} : vector<832x75xbf16>, vector<75x128xbf16>, vector<832x128xf32> -> vector<832x128xf32>
    %4 = vector.shape_cast %3 : vector<832x128xf32> to vector<4x208x128xf32>
    %cst_4 = arith.constant dense<0xFF800000> : vector<208x128xf32>
    %5 = vector.multi_reduction <maximumf>, %4, %cst_4 [0] : vector<4x208x128xf32> to vector<208x128xf32>
    %c0_5 = arith.constant 0 : index
    %c0_6 = arith.constant 0 : index
    %6 = vector.load %arg3[%c0_5, %c0_6] : memref<1x128xf32, #tpu.memory_space<vmem>>, vector<1x128xf32>
    %7 = vector.broadcast %6 : vector<1x128xf32> to vector<208x128xf32>
    %8 = arith.addf %5, %7 : vector<208x128xf32>
    %cst_7 = arith.constant 0.000000e+00 : f32
    %9 = vector.broadcast %cst_7 : f32 to vector<208x128xf32>
    %10 = arith.maximumf %8, %9 : vector<208x128xf32>
    %11 = arith.truncf %10 : vector<208x128xf32> to vector<208x128xbf16>
    %c0_8 = arith.constant 0 : index
    %c0_9 = arith.constant 0 : index
    %12 = vector.load %arg4[%c0_8, %c0_9] : memref<208x128xbf16, #tpu.memory_space<vmem>>, vector<208x128xbf16>
    tpu.vector_store %arg4[%c0_8, %c0_9], %11 {strides = array<i32>} : memref<208x128xbf16, #tpu.memory_space<vmem>>, vector<208x128xbf16>,
    return
  }
  func.func @transform_0(%arg0: i32) -> (i32, i32, i32) {
    %c0_i32 = arith.constant 0 : i32
    %c0_i32_0 = arith.constant 0 : i32
    %c0_i32_1 = arith.constant 0 : i32
    return %c0_i32, %arg0, %c0_i32_0 : i32, i32, i32
  }
  func.func @transform_1(%arg0: i32) -> (i32, i32) {
    %c0_i32 = arith.constant 0 : i32
    %c0_i32_0 = arith.constant 0 : i32
    %c0_i32_1 = arith.constant 0 : i32
    return %c0_i32, %c0_i32_0 : i32, i32
  }
  func.func @transform_2(%arg0: i32) -> (i32, i32) {
    %c0_i32 = arith.constant 0 : i32
    %c0_i32_0 = arith.constant 0 : i32
    %c0_i32_1 = arith.constant 0 : i32
    return %c0_i32, %c0_i32_0 : i32, i32
  }
  func.func @transform_3(%arg0: i32) -> (i32, i32) {
    %c0_i32 = arith.constant 0 : i32
    %c0_i32_0 = arith.constant 0 : i32
    return %arg0, %c0_i32 : i32, i32
  }
}

module attributes {stable_mosaic.version = 11 : i64} {
  func.func @_conv_pool_kernel(%arg0: i32, %arg1: memref<4x32x150xbf16, #tpu.memory_space<vmem>>, %arg2: memref<150x128xbf16, #tpu.memory_space<vmem>>, %arg3: memref<1x128xf32, #tpu.memory_space<vmem>>, %arg4: memref<32x128xbf16, #tpu.memory_space<vmem>>) attributes {dimension_semantics = [#tpu.dimension_semantics<parallel>], iteration_bounds = array<i64: 2>, scalar_prefetch = 0 : i64, scratch_operands = 0 : i64, tpu.core_type = #tpu.core_type<tc>, window_params = [{transform_indices = @transform_0, window_bounds = array<i64: 4, 32, 150>}, {pipeline_mode = #tpu.pipeline_mode<synchronous>, transform_indices = @transform_1, window_bounds = array<i64: 150, 128>}, {pipeline_mode = #tpu.pipeline_mode<synchronous>, transform_indices = @transform_2, window_bounds = array<i64: 1, 128>}, {transform_indices = @transform_3, window_bounds = array<i64: 32, 128>}]} {
    %c0 = arith.constant 0 : index
    %c0_0 = arith.constant 0 : index
    %c0_1 = arith.constant 0 : index
    %0 = vector.load %arg1[%c0, %c0_0, %c0_1] : memref<4x32x150xbf16, #tpu.memory_space<vmem>>, vector<4x32x150xbf16>
    %1 = vector.shape_cast %0 : vector<4x32x150xbf16> to vector<128x150xbf16>
    %c0_2 = arith.constant 0 : index
    %c0_3 = arith.constant 0 : index
    %2 = vector.load %arg2[%c0_2, %c0_3] : memref<150x128xbf16, #tpu.memory_space<vmem>>, vector<150x128xbf16>
    %cst = arith.constant dense<0.000000e+00> : vector<128x128xf32>
    %3 = tpu.matmul %1, %2, %cst {dimension_numbers = #tpu.dot_dimension_numbers<[1], [0], [0], [1], [0, 0, 1, 1], [], []>} : vector<128x150xbf16>, vector<150x128xbf16>, vector<128x128xf32> -> vector<128x128xf32>
    %4 = vector.shape_cast %3 : vector<128x128xf32> to vector<4x32x128xf32>
    %cst_4 = arith.constant dense<0xFF800000> : vector<32x128xf32>
    %5 = vector.multi_reduction <maximumf>, %4, %cst_4 [0] : vector<4x32x128xf32> to vector<32x128xf32>
    %c0_5 = arith.constant 0 : index
    %c0_6 = arith.constant 0 : index
    %6 = vector.load %arg3[%c0_5, %c0_6] : memref<1x128xf32, #tpu.memory_space<vmem>>, vector<1x128xf32>
    %7 = vector.broadcast %6 : vector<1x128xf32> to vector<32x128xf32>
    %8 = arith.addf %5, %7 : vector<32x128xf32>
    %cst_7 = arith.constant 0.000000e+00 : f32
    %9 = vector.broadcast %cst_7 : f32 to vector<32x128xf32>
    %10 = arith.maximumf %8, %9 : vector<32x128xf32>
    %11 = arith.truncf %10 : vector<32x128xf32> to vector<32x128xbf16>
    %c0_8 = arith.constant 0 : index
    %c0_9 = arith.constant 0 : index
    %12 = vector.load %arg4[%c0_8, %c0_9] : memref<32x128xbf16, #tpu.memory_space<vmem>>, vector<32x128xbf16>
    tpu.vector_store %arg4[%c0_8, %c0_9], %11 {strides = array<i32>} : memref<32x128xbf16, #tpu.memory_space<vmem>>, vector<32x128xbf16>,
    return
  }
  func.func @transform_0(%arg0: i32) -> (i32, i32, i32) {
    %c0_i32 = arith.constant 0 : i32
    %c0_i32_0 = arith.constant 0 : i32
    %c0_i32_1 = arith.constant 0 : i32
    return %c0_i32, %arg0, %c0_i32_0 : i32, i32, i32
  }
  func.func @transform_1(%arg0: i32) -> (i32, i32) {
    %c0_i32 = arith.constant 0 : i32
    %c0_i32_0 = arith.constant 0 : i32
    %c0_i32_1 = arith.constant 0 : i32
    return %c0_i32, %c0_i32_0 : i32, i32
  }
  func.func @transform_2(%arg0: i32) -> (i32, i32) {
    %c0_i32 = arith.constant 0 : i32
    %c0_i32_0 = arith.constant 0 : i32
    %c0_i32_1 = arith.constant 0 : i32
    return %c0_i32, %c0_i32_0 : i32, i32
  }
  func.func @transform_3(%arg0: i32) -> (i32, i32) {
    %c0_i32 = arith.constant 0 : i32
    %c0_i32_0 = arith.constant 0 : i32
    return %arg0, %c0_i32 : i32, i32
  }
}

module attributes {stable_mosaic.version = 11 : i64} {
  func.func @_mlp_kernel(%arg0: i32, %arg1: memref<16x400xbf16, #tpu.memory_space<vmem>>, %arg2: memref<400x128xbf16, #tpu.memory_space<vmem>>, %arg3: memref<1x128xf32, #tpu.memory_space<vmem>>, %arg4: memref<128x128xbf16, #tpu.memory_space<vmem>>, %arg5: memref<1x128xf32, #tpu.memory_space<vmem>>, %arg6: memref<128x128xbf16, #tpu.memory_space<vmem>>, %arg7: memref<1x128xf32, #tpu.memory_space<vmem>>, %arg8: memref<16x128xf32, #tpu.memory_space<vmem>>) attributes {dimension_semantics = [#tpu.dimension_semantics<parallel>], iteration_bounds = array<i64: 1>, scalar_prefetch = 0 : i64, scratch_operands = 0 : i64, tpu.core_type = #tpu.core_type<tc>, window_params = [{transform_indices = @transform_0, window_bounds = array<i64: 16, 400>}, {pipeline_mode = #tpu.pipeline_mode<synchronous>, transform_indices = @transform_1, window_bounds = array<i64: 400, 128>}, {pipeline_mode = #tpu.pipeline_mode<synchronous>, transform_indices = @transform_2, window_bounds = array<i64: 1, 128>}, {pipeline_mode = #tpu.pipeline_mode<synchronous>, transform_indices = @transform_3, window_bounds = array<i64: 128, 128>}, {pipeline_mode = #tpu.pipeline_mode<synchronous>, transform_indices = @transform_4, window_bounds = array<i64: 1, 128>}, {pipeline_mode = #tpu.pipeline_mode<synchronous>, transform_indices = @transform_5, window_bounds = array<i64: 128, 128>}, {pipeline_mode = #tpu.pipeline_mode<synchronous>, transform_indices = @transform_6, window_bounds = array<i64: 1, 128>}, {transform_indices = @transform_7, window_bounds = array<i64: 16, 128>}]} {
    %c0 = arith.constant 0 : index
    %c0_0 = arith.constant 0 : index
    %0 = vector.load %arg1[%c0, %c0_0] : memref<16x400xbf16, #tpu.memory_space<vmem>>, vector<16x400xbf16>
    %c0_1 = arith.constant 0 : index
    %c0_2 = arith.constant 0 : index
    %1 = vector.load %arg2[%c0_1, %c0_2] : memref<400x128xbf16, #tpu.memory_space<vmem>>, vector<400x128xbf16>
    %cst = arith.constant dense<0.000000e+00> : vector<16x128xf32>
    %2 = tpu.matmul %0, %1, %cst {dimension_numbers = #tpu.dot_dimension_numbers<[1], [0], [0], [1], [0, 0, 1, 1], [], []>} : vector<16x400xbf16>, vector<400x128xbf16>, vector<16x128xf32> -> vector<16x128xf32>
    %c0_3 = arith.constant 0 : index
    %c0_4 = arith.constant 0 : index
    %3 = vector.load %arg3[%c0_3, %c0_4] : memref<1x128xf32, #tpu.memory_space<vmem>>, vector<1x128xf32>
    %4 = vector.broadcast %3 : vector<1x128xf32> to vector<16x128xf32>
    %5 = arith.addf %2, %4 : vector<16x128xf32>
    %cst_5 = arith.constant 0.000000e+00 : f32
    %6 = vector.broadcast %cst_5 : f32 to vector<16x128xf32>
    %7 = arith.maximumf %5, %6 : vector<16x128xf32>
    %8 = arith.truncf %7 : vector<16x128xf32> to vector<16x128xbf16>
    %c0_6 = arith.constant 0 : index
    %c0_7 = arith.constant 0 : index
    %9 = vector.load %arg4[%c0_6, %c0_7] : memref<128x128xbf16, #tpu.memory_space<vmem>>, vector<128x128xbf16>
    %cst_8 = arith.constant dense<0.000000e+00> : vector<16x128xf32>
    %10 = tpu.matmul %8, %9, %cst_8 {dimension_numbers = #tpu.dot_dimension_numbers<[1], [0], [0], [1], [0, 0, 1, 1], [], []>} : vector<16x128xbf16>, vector<128x128xbf16>, vector<16x128xf32> -> vector<16x128xf32>
    %c0_9 = arith.constant 0 : index
    %c0_10 = arith.constant 0 : index
    %11 = vector.load %arg5[%c0_9, %c0_10] : memref<1x128xf32, #tpu.memory_space<vmem>>, vector<1x128xf32>
    %12 = vector.broadcast %11 : vector<1x128xf32> to vector<16x128xf32>
    %13 = arith.addf %10, %12 : vector<16x128xf32>
    %cst_11 = arith.constant 0.000000e+00 : f32
    %14 = vector.broadcast %cst_11 : f32 to vector<16x128xf32>
    %15 = arith.maximumf %13, %14 : vector<16x128xf32>
    %16 = arith.truncf %15 : vector<16x128xf32> to vector<16x128xbf16>
    %c0_12 = arith.constant 0 : index
    %c0_13 = arith.constant 0 : index
    %17 = vector.load %arg6[%c0_12, %c0_13] : memref<128x128xbf16, #tpu.memory_space<vmem>>, vector<128x128xbf16>
    %cst_14 = arith.constant dense<0.000000e+00> : vector<16x128xf32>
    %18 = tpu.matmul %16, %17, %cst_14 {dimension_numbers = #tpu.dot_dimension_numbers<[1], [0], [0], [1], [0, 0, 1, 1], [], []>} : vector<16x128xbf16>, vector<128x128xbf16>, vector<16x128xf32> -> vector<16x128xf32>
    %c0_15 = arith.constant 0 : index
    %c0_16 = arith.constant 0 : index
    %19 = vector.load %arg7[%c0_15, %c0_16] : memref<1x128xf32, #tpu.memory_space<vmem>>, vector<1x128xf32>
    %20 = vector.broadcast %19 : vector<1x128xf32> to vector<16x128xf32>
    %21 = arith.addf %18, %20 : vector<16x128xf32>
    %c0_17 = arith.constant 0 : index
    %c0_18 = arith.constant 0 : index
    %22 = vector.load %arg8[%c0_17, %c0_18] : memref<16x128xf32, #tpu.memory_space<vmem>>, vector<16x128xf32>
    tpu.vector_store %arg8[%c0_17, %c0_18], %21 {strides = array<i32>} : memref<16x128xf32, #tpu.memory_space<vmem>>, vector<16x128xf32>,
    return
  }
  func.func @transform_0(%arg0: i32) -> (i32, i32) {
    %c0_i32 = arith.constant 0 : i32
    %c0_i32_0 = arith.constant 0 : i32
    return %arg0, %c0_i32 : i32, i32
  }
  func.func @transform_1(%arg0: i32) -> (i32, i32) {
    %c0_i32 = arith.constant 0 : i32
    %c0_i32_0 = arith.constant 0 : i32
    %c0_i32_1 = arith.constant 0 : i32
    return %c0_i32, %c0_i32_0 : i32, i32
  }
  func.func @transform_2(%arg0: i32) -> (i32, i32) {
    %c0_i32 = arith.constant 0 : i32
    %c0_i32_0 = arith.constant 0 : i32
    %c0_i32_1 = arith.constant 0 : i32
    return %c0_i32, %c0_i32_0 : i32, i32
  }
  func.func @transform_3(%arg0: i32) -> (i32, i32) {
    %c0_i32 = arith.constant 0 : i32
    %c0_i32_0 = arith.constant 0 : i32
    %c0_i32_1 = arith.constant 0 : i32
    return %c0_i32, %c0_i32_0 : i32, i32
  }
  func.func @transform_4(%arg0: i32) -> (i32, i32) {
    %c0_i32 = arith.constant 0 : i32
    %c0_i32_0 = arith.constant 0 : i32
    %c0_i32_1 = arith.constant 0 : i32
    return %c0_i32, %c0_i32_0 : i32, i32
  }
  func.func @transform_5(%arg0: i32) -> (i32, i32) {
    %c0_i32 = arith.constant 0 : i32
    %c0_i32_0 = arith.constant 0 : i32
    %c0_i32_1 = arith.constant 0 : i32
    return %c0_i32, %c0_i32_0 : i32, i32
  }
  func.func @transform_6(%arg0: i32) -> (i32, i32) {
    %c0_i32 = arith.constant 0 : i32
    %c0_i32_0 = arith.constant 0 : i32
    %c0_i32_1 = arith.constant 0 : i32
    return %c0_i32, %c0_i32_0 : i32, i32
  }
  func.func @transform_7(%arg0: i32) -> (i32, i32) {
    %c0_i32 = arith.constant 0 : i32
    %c0_i32_0 = arith.constant 0 : i32
    return %arg0, %c0_i32 : i32, i32
  }
}

</mosaic_0001>

<bundles_post_ra>
// kernel: net_forward.3
= control target key start
LH: loop header
LB: loop body
LE: loop exit
PB: predicated region body
PF: predicated region fallthrough
CT: control target
= control target key end

     0   :  { %s2532_s12 = smov 0   ;;  %s2534_s13 = smov 0   ;;  %s3003_s0 = inlined_call_operand.vmem [shape: bf16[4,416,75], index: 0, kind: input, shape index: {}]   ;;  %s3004_s1 = inlined_call_operand.vmem [shape: bf16[75,128], index: 1, kind: input, shape index: {}]   ;;  %s3005_s2 = inlined_call_operand.vmem [shape: f32[1,128], index: 2, kind: input, shape index: {}]   ;;  %s3006_s3 = inlined_call_operand.vmem [shape: bf16[416,128], index: 3, kind: output, shape index: {}]  }
   0x1   :  { %s2536_s14 = smov 0  }
   0x2 LB: > { %s1973_s15 = sadd.s32 4294967295, %s2509_s14   ;;  %s2549_s16 = sadd.s32 1, %s2509_s14   ;;  %s2509_s14 = sphi %s2536_s14, %s3017_s14   ;;  %s2505_s13 = sphi %s2534_s13, %s3016_s13   ;;  %s2501_s12 = sphi %s2532_s12, %s3015_s12  }
   0x3   : > { %s17_s17 = ssub.s32 %s2509_s14, %s2549_s16  ;;  %s20_s18 = sadd.s32 1, %s2505_s13 }
   0x4   : > { %p18_p0 = scmp.eq.s32.totalorder %s17_s17, 0  ;;  %p27_p1 = scmp.ne.s32.totalorder %s2505_s13, %s2501_s12 }
   0x5   : > { %p28_p2 = scmp.eq.s32.totalorder %s2509_s14, 0  ;;  %p1976_p4 = scmp.ge.s32.totalorder %s2509_s14, 2 }
   0x6   : > { %s2558_s19 = scalar_select %p18_p0, %s2505_s13, %s20_s18  }
   0x7   : > { %p29_p3 = por %p28_p2, %p27_p1  ;;  %127 = sbr.rel (%p1976_p4) target bundleno = 45 (0x2d), region = 24 }
   0xe   : > { %130 = sbr.rel (!%p29_p3) target bundleno = 45 (0x2d), region = 28  ;;  %s132_s20 = sand.u32 (%p29_p3), 1, %s2505_s13  }
   0xf   : > { %s2118_s21 = smul.u32 (%p29_p3), 104, %s2509_s14 }
  0x10   : > { %s2403_s22 = smul.u32 (%p29_p3), 416, %s132_s20 }
  0x11   : > { %s2566_s25 = scalar_lea.vmem (%p29_p3), %s3003_s0, %s2118_s21 }
  0x12   : > { %v153_v0 = vld [vmem:[%s2566_s25] sm:$0xff] (%p29_p3)   ;;  %v157_v1 = vld [vmem:[%s2566_s25 + $0x8] sm:$0xff] (%p29_p3)   ;;  %v161_v2 = vld [vmem:[%s2566_s25 + $0x10] sm:$0xff] (%p29_p3)   ;;  %s2571_s26 = scalar_lea.vmem (%p29_p3), [#allocation2], %s2403_s22 }
  0x13   : > { %154 = vst [vmem:[%s2571_s26] sm:$0xff] (%p29_p3), %v153_v0   ;;  %158 = vst [vmem:[%s2571_s26 + $0x8] sm:$0xff] (%p29_p3), %v157_v1   ;;  %v165_v3 = vld [vmem:[%s2566_s25 + $0x18] sm:$0xff] (%p29_p3)   ;;  %v169_v4 = vld [vmem:[%s2566_s25 + $0x20] sm:$0xff] (%p29_p3)  }
  0x14   : > { %162 = vst [vmem:[%s2571_s26 + $0x10] sm:$0xff] (%p29_p3), %v161_v2   ;;  %v173_v5 = vld [vmem:[%s2566_s25 + $0x28] sm:$0xff] (%p29_p3)   ;;  %166 = vst [vmem:[%s2571_s26 + $0x18] sm:$0xff] (%p29_p3), %v165_v3   ;;  %v177_v6 = vld [vmem:[%s2566_s25 + $0x30] sm:$0xff] (%p29_p3)  }
  0x15   : > { %170 = vst [vmem:[%s2571_s26 + $0x20] sm:$0xff] %v169_v4   ;;  %174 = vst [vmem:[%s2571_s26 + $0x28] sm:$0xff] %v173_v5   ;;  %v181_v7 = vld [vmem:[%s2566_s25 + $0x38] sm:$0xff]   ;;  %v185_v8 = vld [vmem:[%s2566_s25 + $0x40] sm:$0xff]  }
  0x16   : > { %178 = vst [vmem:[%s2571_s26 + $0x30] sm:$0xff] %v177_v6   ;;  %182 = vst [vmem:[%s2571_s26 + $0x38] sm:$0xff] %v181_v7   ;;  %v189_v9 = vld [vmem:[%s2566_s25 + $0x48] sm:$0xff]   ;;  %v193_v10 = vld [vmem:[%s2566_s25 + $0x50] sm:$0xff]  }
  0x17   : > { %186 = vst [vmem:[%s2571_s26 + $0x40] sm:$0xff] %v185_v8   ;;  %v197_v11 = vld [vmem:[%s2566_s25 + $0x58] sm:$0xff]   ;;  %190 = vst [vmem:[%s2571_s26 + $0x48] sm:$0xff] %v189_v9   ;;  %v201_v12 = vld [vmem:[%s2566_s25 + $0x60] sm:$0xff]  }
  0x18   : > { %194 = vst [vmem:[%s2571_s26 + $0x50] sm:$0xff] %v193_v10   ;;  %198 = vst [vmem:[%s2571_s26 + $0x58] sm:$0xff] %v197_v11   ;;  %v205_v13 = vld [vmem:[%s2566_s25 + $0xd0] sm:$0xff]   ;;  %v209_v14 = vld [vmem:[%s2566_s25 + $0xd8] sm:$0xff]  }
  0x19   : > { %202 = vst [vmem:[%s2571_s26 + $0x60] sm:$0xff] %v201_v12   ;;  %206 = vst [vmem:[%s2571_s26 + $0x68] sm:$0xff] %v205_v13   ;;  %v213_v15 = vld [vmem:[%s2566_s25 + $0xe0] sm:$0xff]   ;;  %v217_v16 = vld [vmem:[%s2566_s25 + $0xe8] sm:$0xff]  }
  0x1a   : > { %210 = vst [vmem:[%s2571_s26 + $0x70] sm:$0xff] %v209_v14   ;;  %v221_v17 = vld [vmem:[%s2566_s25 + $0xf0] sm:$0xff]   ;;  %214 = vst [vmem:[%s2571_s26 + $0x78] sm:$0xff] %v213_v15   ;;  %v225_v18 = vld [vmem:[%s2566_s25 + $0xf8] sm:$0xff]  }
  0x1b   : > { %218 = vst [vmem:[%s2571_s26 + $0x80] sm:$0xff] %v217_v16   ;;  %222 = vst [vmem:[%s2571_s26 + $0x88] sm:$0xff] %v221_v17   ;;  %v229_v19 = vld [vmem:[%s2566_s25 + $0x100] sm:$0xff]   ;;  %v233_v20 = vld [vmem:[%s2566_s25 + $0x108] sm:$0xff]  }
  0x1c   : > { %226 = vst [vmem:[%s2571_s26 + $0x90] sm:$0xff] %v225_v18   ;;  %230 = vst [vmem:[%s2571_s26 + $0x98] sm:$0xff] %v229_v19   ;;  %v237_v21 = vld [vmem:[%s2566_s25 + $0x110] sm:$0xff]   ;;  %v241_v22 = vld [vmem:[%s2566_s25 + $0x118] sm:$0xff]  }
  0x1d   : > { %234 = vst [vmem:[%s2571_s26 + $0xa0] sm:$0xff] %v233_v20   ;;  %v245_v23 = vld [vmem:[%s2566_s25 + $0x120] sm:$0xff]   ;;  %238 = vst [vmem:[%s2571_s26 + $0xa8] sm:$0xff] %v237_v21   ;;  %v249_v24 = vld [vmem:[%s2566_s25 + $0x128] sm:$0xff]  }
  0x1e   : > { %242 = vst [vmem:[%s2571_s26 + $0xb0] sm:$0xff] %v241_v22   ;;  %246 = vst [vmem:[%s2571_s26 + $0xb8] sm:$0xff] %v245_v23   ;;  %v253_v25 = vld [vmem:[%s2566_s25 + $0x130] sm:$0xff]   ;;  %v257_v26 = vld [vmem:[%s2566_s25 + $0x1a0] sm:$0xff]  }
  0x1f   : > { %250 = vst [vmem:[%s2571_s26 + $0xc0] sm:$0xff] %v249_v24   ;;  %254 = vst [vmem:[%s2571_s26 + $0xc8] sm:$0xff] %v253_v25   ;;  %v261_v27 = vld [vmem:[%s2566_s25 + $0x1a8] sm:$0xff]   ;;  %v265_v28 = vld [vmem:[%s2566_s25 + $0x1b0] sm:$0xff]  }
  0x20   : > { %258 = vst [vmem:[%s2571_s26 + $0xd0] sm:$0xff] %v257_v26   ;;  %v269_v29 = vld [vmem:[%s2566_s25 + $0x1b8] sm:$0xff]   ;;  %262 = vst [vmem:[%s2571_s26 + $0xd8] sm:$0xff] %v261_v27   ;;  %v273_v30 = vld [vmem:[%s2566_s25 + $0x1c0] sm:$0xff]  }
  0x21   : > { %266 = vst [vmem:[%s2571_s26 + $0xe0] sm:$0xff] %v265_v28   ;;  %270 = vst [vmem:[%s2571_s26 + $0xe8] sm:$0xff] %v269_v29   ;;  %v277_v31 = vld [vmem:[%s2566_s25 + $0x1c8] sm:$0xff]   ;;  %v281_v32 = vld [vmem:[%s2566_s25 + $0x1d0] sm:$0xff]  }
  0x22   : > { %274 = vst [vmem:[%s2571_s26 + $0xf0] sm:$0xff] %v273_v30   ;;  %278 = vst [vmem:[%s2571_s26 + $0xf8] sm:$0xff] %v277_v31   ;;  %v285_v33 = vld [vmem:[%s2566_s25 + $0x1d8] sm:$0xff]   ;;  %v289_v34 = vld [vmem:[%s2566_s25 + $0x1e0] sm:$0xff]  }
  0x23   : > { %282 = vst [vmem:[%s2571_s26 + $0x100] sm:$0xff] %v281_v32   ;;  %v293_v35 = vld [vmem:[%s2566_s25 + $0x1e8] sm:$0xff]   ;;  %286 = vst [vmem:[%s2571_s26 + $0x108] sm:$0xff] %v285_v33   ;;  %v297_v36 = vld [vmem:[%s2566_s25 + $0x1f0] sm:$0xff]  }
  0x24   : > { %290 = vst [vmem:[%s2571_s26 + $0x110] sm:$0xff] %v289_v34   ;;  %294 = vst [vmem:[%s2571_s26 + $0x118] sm:$0xff] %v293_v35   ;;  %v301_v37 = vld [vmem:[%s2566_s25 + $0x1f8] sm:$0xff]   ;;  %v305_v38 = vld [vmem:[%s2566_s25 + $0x200] sm:$0xff]  }
  0x25   : > { %298 = vst [vmem:[%s2571_s26 + $0x120] sm:$0xff] %v297_v36   ;;  %302 = vst [vmem:[%s2571_s26 + $0x128] sm:$0xff] %v301_v37   ;;  %v309_v39 = vld [vmem:[%s2566_s25 + $0x270] sm:$0xff]   ;;  %v313_v40 = vld [vmem:[%s2566_s25 + $0x278] sm:$0xff]  }
  0x26   : > { %306 = vst [vmem:[%s2571_s26 + $0x130] sm:$0xff] %v305_v38   ;;  %v317_v41 = vld [vmem:[%s2566_s25 + $0x280] sm:$0xff]   ;;  %310 = vst [vmem:[%s2571_s26 + $0x138] sm:$0xff] %v309_v39   ;;  %v321_v42 = vld [vmem:[%s2566_s25 + $0x288] sm:$0xff]  }
  0x27   : > { %314 = vst [vmem:[%s2571_s26 + $0x140] sm:$0xff] %v313_v40   ;;  %318 = vst [vmem:[%s2571_s26 + $0x148] sm:$0xff] %v317_v41   ;;  %v325_v43 = vld [vmem:[%s2566_s25 + $0x290] sm:$0xff]   ;;  %v329_v44 = vld [vmem:[%s2566_s25 + $0x298] sm:$0xff]  }
  0x28   : > { %322 = vst [vmem:[%s2571_s26 + $0x150] sm:$0xff] %v321_v42   ;;  %326 = vst [vmem:[%s2571_s26 + $0x158] sm:$0xff] %v325_v43   ;;  %v333_v45 = vld [vmem:[%s2566_s25 + $0x2a0] sm:$0xff]   ;;  %v337_v46 = vld [vmem:[%s2566_s25 + $0x2a8] sm:$0xff]  }
  0x29   : > { %330 = vst [vmem:[%s2571_s26 + $0x160] sm:$0xff] %v329_v44   ;;  %v341_v47 = vld [vmem:[%s2566_s25 + $0x2b0] sm:$0xff]   ;;  %334 = vst [vmem:[%s2571_s26 + $0x168] sm:$0xff] %v333_v45   ;;  %v345_v48 = vld [vmem:[%s2566_s25 + $0x2b8] sm:$0xff]  }
  0x2a   : > { %338 = vst [vmem:[%s2571_s26 + $0x170] sm:$0xff] %v337_v46   ;;  %342 = vst [vmem:[%s2571_s26 + $0x178] sm:$0xff] %v341_v47   ;;  %v349_v49 = vld [vmem:[%s2566_s25 + $0x2c0] sm:$0xff]   ;;  %v353_v50 = vld [vmem:[%s2566_s25 + $0x2c8] sm:$0xff]  }
  0x2b   : > { %346 = vst [vmem:[%s2571_s26 + $0x180] sm:$0xff] %v345_v48   ;;  %350 = vst [vmem:[%s2571_s26 + $0x188] sm:$0xff] %v349_v49   ;;  %v357_v51 = vld [vmem:[%s2566_s25 + $0x2d0] sm:$0xff]  }
  0x2c   : > { %354 = vst [vmem:[%s2571_s26 + $0x190] sm:$0xff] %v353_v50   ;;  %358 = vst [vmem:[%s2571_s26 + $0x198] sm:$0xff] %v357_v51  }
  0x2d PF: > { %p1978_p5 = scmp.ge.s32.totalorder %s2509_s14, 1  ;;  %p590_p6 = scmp.lt.s32.totalorder %s2509_s14, 3 }
  0x2f   : > { %p591_p7 = pnand %p1978_p5, %p590_p6 }
  0x31   : > { %594 = sbr.rel (%p591_p7) target bundleno = 401 (0x191), region = 69 }
  0x38   : > { %v2430_v52 = vld [vmem:[%s3004_s1] sm:$0xff]   ;;  %v2431_v53 = vld [vmem:[%s3004_s1 + $0x8] sm:$0xff]   ;;  %vm1188_vm0 = vcmask 1044480   ;;  %v2432_v54 = vld [vmem:[%s3004_s1 + $0x10] sm:$0xff]   ;;  %s597_s6 = sand.u32 1, %s2501_s12   ;;  %vm1189_vm1 = vcmask 1045504  }
  0x39   : > { %2279 = vmatprep.subr.bf16.mxu0 %v2430_v52  ;;  %2393 = vmatprep.subr.bf16.mxu1 %v2430_v52  ;;  %v2511_v55 = vmov 65535   ;;  %s2404_s7 = smul.u32 416, %s597_s6  ;;  %v2433_v57 = vld [vmem:[%s3004_s1 + $0x18] sm:$0xff]   ;;  %v2434_v58 = vld [vmem:[%s3004_s1 + $0x20] sm:$0x3f]   ;;  %vm1031_vm2 = vcmask 613376  }
  0x3a   : > { %2280 = vmatpush3.bf16.msra.mxu0 %v2430_v52  ;;  %2398 = vmatpush3.bf16.msra.mxu1 %v2430_v52  ;;  %v1190_v56 = vsel %vm1188_vm0, 4294967295, %v2511_v55  ;;  %s621_s12 = smul.u32 26, %s1973_s15 }
  0x3b   : > { %2281 = vmatprep.subr.bf16.mxu0 %v2431_v53  ;;  %2394 = vmatprep.subr.bf16.mxu1 %v2431_v53  ;;  %v1191_v59 = vsel %vm1189_vm1, %v1190_v56, 0  ;;  %s2692_s17 = scalar_lea.vmem [#allocation2], %s2404_s7 }
  0x3c   : > { %v2435_v60 = vld [vmem:[%s2692_s17] sm:$0xff]   ;;  %v2437_v61 = vld [vmem:[%s2692_s17 + $0xd0] sm:$0xff]   ;;  %v1193_v62 = vand.u32 %v2434_v58, %v1191_v59  ;;  %v2436_v63 = vld [vmem:[%s2692_s17 + $0x8] sm:$0xff]   ;;  %p622_p8 = scmp.lt.s32.totalorder %s621_s12, 51 }
  0x3d   : > { %2289 = vmatprep.mubr.msk.bf16.mxu0 %vm1031_vm2, %v2435_v60  ;;  %2341 = vmatprep.mubr.msk.bf16.mxu1 %vm1031_vm2, %v2437_v61  ;;  %v2438_v0 = vld [vmem:[%s2692_s17 + $0xd8] sm:$0xff]   ;;  %v2439_v1 = vld [vmem:[%s2692_s17 + $0x10] sm:$0xff]   ;;  %v2441_v2 = vld [vmem:[%s2692_s17 + $0xe0] sm:$0xff]  }
  0x3e   : > { %2282 = vmatpush3.bf16.msra.mxu0 %v2431_v53  ;;  %2399 = vmatpush3.bf16.msra.mxu1 %v2431_v53  ;;  %v2440_v3 = vld [vmem:[%s2692_s17 + $0x18] sm:$0xff]   ;;  %v2442_v4 = vld [vmem:[%s2692_s17 + $0xe8] sm:$0xff]   ;;  %v2443_v5 = vld [vmem:[%s2692_s17 + $0x20] sm:$0xff]   ;;  %s3019_s12 = smov (!%p622_p8, %s621_s12), 51 }
  0x3f   : > { %2283 = vmatprep.subr.bf16.mxu0 %v2432_v54  ;;  %2395 = vmatprep.subr.bf16.mxu1 %v2432_v54  ;;  %v2445_v6 = vld [vmem:[%s2692_s17 + $0xf0] sm:$0xff]   ;;  %v2444_v7 = vld [vmem:[%s2692_s17 + $0x28] sm:$0xff]   ;;  %v2446_v8 = vld [vmem:[%s2692_s17 + $0xf8] sm:$0xff]   ;;  %s1979_s14 = sshll.u32 %s3019_s12, 2 }
  0x40   : > { %v2447_v9 = vld [vmem:[%s2692_s17 + $0x30] sm:$0xff]   ;;  %v2449_v10 = vld [vmem:[%s2692_s17 + $0x100] sm:$0xff]   ;;  %v2448_v11 = vld [vmem:[%s2692_s17 + $0x38] sm:$0xff]   ;;  %s2910_s22 = scalar_lea.vmem %s3006_s3, %s1979_s14 }
  0x41   : > { %v2450_v12 = vld [vmem:[%s2692_s17 + $0x108] sm:$0xff]   ;;  %v2451_v13 = vld [vmem:[%s2692_s17 + $0x40] sm:$0xff]   ;;  %v2453_v14 = vld [vmem:[%s2692_s17 + $0x110] sm:$0xff]  }
  0x42   : > { %2284 = vmatpush3.bf16.msra.mxu0 %v2432_v54  ;;  %2400 = vmatpush3.bf16.msra.mxu1 %v2432_v54  ;;  %v2452_v15 = vld [vmem:[%s2692_s17 + $0x48] sm:$0xff]   ;;  %v2454_v16 = vld [vmem:[%s2692_s17 + $0x118] sm:$0xff]   ;;  %v2455_v17 = vld [vmem:[%s2692_s17 + $0x50] sm:$0xff]  }
  0x43   : > { %2285 = vmatprep.subr.bf16.mxu0 %v2433_v57  ;;  %2396 = vmatprep.subr.bf16.mxu1 %v2433_v57  ;;  %v2457_v18 = vld [vmem:[%s2692_s17 + $0x120] sm:$0xff]   ;;  %v2456_v19 = vld [vmem:[%s2692_s17 + $0x58] sm:$0xff]   ;;  %v2458_v20 = vld [vmem:[%s2692_s17 + $0x128] sm:$0xff]  }
  0x44   : > { %v2459_v21 = vld [vmem:[%s2692_s17 + $0x60] sm:$0xff]   ;;  %v2461_v22 = vld [vmem:[%s2692_s17 + $0x130] sm:$0xff]   ;;  %v2460_v23 = vld [vmem:[%s2692_s17 + $0x68] sm:$0xff]  }
  0x45   : > { %v2462_v24 = vld [vmem:[%s2692_s17 + $0x138] sm:$0xff]   ;;  %v2463_v25 = vld [vmem:[%s2692_s17 + $0x70] sm:$0xff]   ;;  %v2465_v26 = vld [vmem:[%s2692_s17 + $0x140] sm:$0xff]  }
  0x46   : > { %2286 = vmatpush3.bf16.msra.mxu0 %v2433_v57  ;;  %2401 = vmatpush3.bf16.msra.mxu1 %v2433_v57  ;;  %v2464_v27 = vld [vmem:[%s2692_s17 + $0x78] sm:$0xff]   ;;  %v2466_v28 = vld [vmem:[%s2692_s17 + $0x148] sm:$0xff]   ;;  %v2467_v29 = vld [vmem:[%s2692_s17 + $0x80] sm:$0xff]  }
  0x47   : > { %2287 = vmatprep.subr.bf16.mxu0 %v1193_v62  ;;  %2397 = vmatprep.subr.bf16.mxu1 %v1193_v62  ;;  %v2469_v30 = vld [vmem:[%s2692_s17 + $0x150] sm:$0xff]   ;;  %v2468_v31 = vld [vmem:[%s2692_s17 + $0x88] sm:$0xff]   ;;  %v2470_v32 = vld [vmem:[%s2692_s17 + $0x158] sm:$0xff]  }
  0x48   : > { %v2471_v33 = vld [vmem:[%s2692_s17 + $0x90] sm:$0xff]   ;;  %v2473_v34 = vld [vmem:[%s2692_s17 + $0x160] sm:$0xff]   ;;  %v2472_v35 = vld [vmem:[%s2692_s17 + $0x98] sm:$0xff]  }
  0x49   : > { %v2474_v36 = vld [vmem:[%s2692_s17 + $0x168] sm:$0xff]   ;;  %v2475_v37 = vld [vmem:[%s2692_s17 + $0xa0] sm:$0xff]   ;;  %v2477_v38 = vld [vmem:[%s2692_s17 + $0x170] sm:$0xff]  }
  0x4a   : > { %2288 = vmatpush3.bf16.msra.mxu0 %v1193_v62  ;;  %2402 = vmatpush3.bf16.msra.mxu1 %v1193_v62  ;;  %v2476_v39 = vld [vmem:[%s2692_s17 + $0xa8] sm:$0xff]   ;;  %v2478_v40 = vld [vmem:[%s2692_s17 + $0x178] sm:$0xff]   ;;  %v2479_v41 = vld [vmem:[%s2692_s17 + $0xb0] sm:$0xff]  }
  0x4b   : > { %v2481_v42 = vld [vmem:[%s2692_s17 + $0x180] sm:$0xff]   ;;  %v2480_v43 = vld [vmem:[%s2692_s17 + $0xb8] sm:$0xff]   ;;  %v2482_v44 = vld [vmem:[%s2692_s17 + $0x188] sm:$0xff]  }
  0x4c   : > { %v2483_v45 = vld [vmem:[%s2692_s17 + $0xc0] sm:$0xff]   ;;  %v2485_v46 = vld [vmem:[%s2692_s17 + $0x190] sm:$0xff]   ;;  %v2484_v47 = vld [vmem:[%s2692_s17 + $0xc8] sm:$0xff]  }
  0x4d   : > { %2290 = vmatmul.mubr.msk.bf16.vlgmr.msra.gmra.mrb[0].mxu0 %vm1031_vm2, %v2436_v63  ;;  %2342 = vmatmul.mubr.msk.bf16.vlgmr.msra.gmra.mrb[0].mxu1 %vm1031_vm2, %v2438_v0  ;;  %v2486_v48 = vld [vmem:[%s2692_s17 + $0x198] sm:$0xff]  }
  0x4e   : > { %2293 = vmatprep.mubr.msk.bf16.mxu0 %vm1031_vm2, %v2439_v1  ;;  %2345 = vmatprep.mubr.msk.bf16.mxu1 %vm1031_vm2, %v2441_v2 }
  0x55   : > { %2294 = vmatmul.mubr.msk.bf16.gmra.mrb[4].mxu0 %vm1031_vm2, %v2440_v3  ;;  %2346 = vmatmul.mubr.msk.bf16.gmra.mrb[4].mxu1 %vm1031_vm2, %v2442_v4 }
  0x56   : > { %2297 = vmatprep.mubr.msk.bf16.mxu0 %vm1031_vm2, %v2443_v5  ;;  %2349 = vmatprep.mubr.msk.bf16.mxu1 %vm1031_vm2, %v2445_v6 }
  0x5d   : > { %2298 = vmatmul.mubr.msk.bf16.gmra.mrb[8].mxu0 %vm1031_vm2, %v2444_v7  ;;  %2350 = vmatmul.mubr.msk.bf16.gmra.mrb[8].mxu1 %vm1031_vm2, %v2446_v8 }
  0x5e   : > { %2301 = vmatprep.mubr.msk.bf16.mxu0 %vm1031_vm2, %v2447_v9  ;;  %2353 = vmatprep.mubr.msk.bf16.mxu1 %vm1031_vm2, %v2449_v10 }
  0x65   : > { %2302 = vmatmul.mubr.msk.bf16.gmra.mrb[12].mxu0 %vm1031_vm2, %v2448_v11  ;;  %2354 = vmatmul.mubr.msk.bf16.gmra.mrb[12].mxu1 %vm1031_vm2, %v2450_v12 }
  0x66   : > { %2305 = vmatprep.mubr.msk.bf16.mxu0 %vm1031_vm2, %v2451_v13  ;;  %2357 = vmatprep.mubr.msk.bf16.mxu1 %vm1031_vm2, %v2453_v14 }
  0x6d   : > { %2306 = vmatmul.mubr.msk.bf16.gmra.mrb[16].mxu0 %vm1031_vm2, %v2452_v15  ;;  %2358 = vmatmul.mubr.msk.bf16.gmra.mrb[16].mxu1 %vm1031_vm2, %v2454_v16 }
  0x6e   : > { %2309 = vmatprep.mubr.msk.bf16.mxu0 %vm1031_vm2, %v2455_v17  ;;  %2361 = vmatprep.mubr.msk.bf16.mxu1 %vm1031_vm2, %v2457_v18 }
  0x75   : > { %2310 = vmatmul.mubr.msk.bf16.gmra.mrb[20].mxu0 %vm1031_vm2, %v2456_v19  ;;  %2362 = vmatmul.mubr.msk.bf16.gmra.mrb[20].mxu1 %vm1031_vm2, %v2458_v20 }
  0x76   : > { %2313 = vmatprep.mubr.msk.bf16.mxu0 %vm1031_vm2, %v2459_v21  ;;  %2365 = vmatprep.mubr.msk.bf16.mxu1 %vm1031_vm2, %v2461_v22 }
  0x7d   : > { %2314 = vmatmul.mubr.msk.bf16.gmra.mrb[24].mxu0 %vm1031_vm2, %v2460_v23  ;;  %2366 = vmatmul.mubr.msk.bf16.gmra.mrb[24].mxu1 %vm1031_vm2, %v2462_v24 }
  0x7e   : > { %2317 = vmatprep.mubr.msk.bf16.mxu0 %vm1031_vm2, %v2463_v25  ;;  %2369 = vmatprep.mubr.msk.bf16.mxu1 %vm1031_vm2, %v2465_v26 }
  0x85   : > { %2318 = vmatmul.mubr.msk.bf16.gmra.mrb[28].mxu0 %vm1031_vm2, %v2464_v27  ;;  %2370 = vmatmul.mubr.msk.bf16.gmra.mrb[28].mxu1 %vm1031_vm2, %v2466_v28 }
  0x86   : > { %2321 = vmatprep.mubr.msk.bf16.mxu0 %vm1031_vm2, %v2467_v29  ;;  %2373 = vmatprep.mubr.msk.bf16.mxu1 %vm1031_vm2, %v2469_v30 }
  0x8d   : > { %2322 = vmatmul.mubr.msk.bf16.gmra.mrb[32].mxu0 %vm1031_vm2, %v2468_v31  ;;  %2374 = vmatmul.mubr.msk.bf16.gmra.mrb[32].mxu1 %vm1031_vm2, %v2470_v32 }
  0x8e   : > { %2325 = vmatprep.mubr.msk.bf16.mxu0 %vm1031_vm2, %v2471_v33  ;;  %2377 = vmatprep.mubr.msk.bf16.mxu1 %vm1031_vm2, %v2473_v34 }
  0x95   : > { %2326 = vmatmul.mubr.msk.bf16.gmra.mrb[36].mxu0 %vm1031_vm2, %v2472_v35  ;;  %2378 = vmatmul.mubr.msk.bf16.gmra.mrb[36].mxu1 %vm1031_vm2, %v2474_v36 }
  0x96   : > { %2329 = vmatprep.mubr.msk.bf16.mxu0 %vm1031_vm2, %v2475_v37  ;;  %2381 = vmatprep.mubr.msk.bf16.mxu1 %vm1031_vm2, %v2477_v38 }
  0x9d   : > { %2330 = vmatmul.mubr.msk.bf16.gmra.mrb[40].mxu0 %vm1031_vm2, %v2476_v39  ;;  %2382 = vmatmul.mubr.msk.bf16.gmra.mrb[40].mxu1 %vm1031_vm2, %v2478_v40 }
  0x9e   : > { %2333 = vmatprep.mubr.msk.bf16.mxu0 %vm1031_vm2, %v2479_v41  ;;  %2385 = vmatprep.mubr.msk.bf16.mxu1 %vm1031_vm2, %v2481_v42 }
  0xa5   : > { %2334 = vmatmul.mubr.msk.bf16.gmra.mrb[44].mxu0 %vm1031_vm2, %v2480_v43  ;;  %2386 = vmatmul.mubr.msk.bf16.gmra.mrb[44].mxu1 %vm1031_vm2, %v2482_v44  ;;  %v2899_v44 = vld [vmem:[%s3005_s2] ss:$0 sm:$0xff] }
  0xa6   : > { %2337 = vmatprep.mubr.msk.bf16.mxu0 %vm1031_vm2, %v2483_v45  ;;  %2389 = vmatprep.mubr.msk.bf16.mxu1 %vm1031_vm2, %v2485_v46 }
  0xad   : > { %2338 = vmatmul.mubr.msk.bf16.gmra.mrb[48].mxu0 %vm1031_vm2, %v2484_v47  ;;  %2390 = vmatmul.mubr.msk.bf16.gmra.mrb[48].mxu1 %vm1031_vm2, %v2486_v48 }
 0x120   : > { %v2798_v49 = vpop.f32.mrb[0].mxu0  ;;  %v2800_v50 = vpop.f32.mrb[0].mxu1 }
 0x121   : > { %v1229_v51 = vpop.f32.mrb[1].mxu0  ;;  %v1437_v52 = vpop.f32.mrb[1].mxu1 }
 0x122   : > { %v2802_v53 = vpop.f32.mrb[2].mxu0  ;;  %v2804_v54 = vpop.f32.mrb[2].mxu1 }
 0x123   : > { %v1232_v55 = vpop.f32.mrb[3].mxu0  ;;  %v1440_v56 = vpop.f32.mrb[3].mxu1 }
 0x128   : > { %v2806_v57 = vpop.f32.mrb[4].mxu0  ;;  %v2808_v58 = vpop.f32.mrb[4].mxu1 }
 0x129   : > { %v2810_v59 = vpop.f32.mrb[5].mxu0  ;;  %v2812_v60 = vpop.f32.mrb[5].mxu1 }
 0x12a   : > { %v2814_v61 = vpop.f32.mrb[6].mxu0  ;;  %v2816_v62 = vpop.f32.mrb[6].mxu1 }
 0x12b   : > { %v2818_v63 = vpop.f32.mrb[7].mxu0  ;;  %v2820_v0 = vpop.f32.mrb[7].mxu1 }
 0x130   : > { %v2822_v1 = vpop.f32.mrb[8].mxu0  ;;  %v2824_v2 = vpop.f32.mrb[8].mxu1 }
 0x131   : > { %v2826_v3 = vpop.f32.mrb[9].mxu0  ;;  %v2828_v4 = vpop.f32.mrb[9].mxu1 }
 0x132   : > { %v2830_v5 = vpop.f32.mrb[10].mxu0  ;;  %v2832_v6 = vpop.f32.mrb[10].mxu1 }
 0x133   : > { %v2834_v7 = vpop.f32.mrb[11].mxu0  ;;  %v2836_v8 = vpop.f32.mrb[11].mxu1 }
 0x138   : > { %v2838_v9 = vpop.f32.mrb[12].mxu0  ;;  %v2840_v10 = vpop.f32.mrb[12].mxu1 }
 0x139   : > { %v2842_v11 = vpop.f32.mrb[13].mxu0  ;;  %v2844_v12 = vpop.f32.mrb[13].mxu1 }
 0x13a   : > { %v2846_v13 = vpop.f32.mrb[14].mxu0  ;;  %v2848_v14 = vpop.f32.mrb[14].mxu1 }
 0x13b   : > { %v2850_v15 = vpop.f32.mrb[15].mxu0  ;;  %v2852_v16 = vpop.f32.mrb[15].mxu1 }
 0x140   : > { %v2854_v17 = vpop.f32.mrb[16].mxu0  ;;  %v2856_v18 = vpop.f32.mrb[16].mxu1 }
 0x141   : > { %v2858_v19 = vpop.f32.mrb[17].mxu0  ;;  %v2860_v20 = vpop.f32.mrb[17].mxu1 }
 0x142   : > { %v2862_v21 = vpop.f32.mrb[18].mxu0  ;;  %v2864_v22 = vpop.f32.mrb[18].mxu1 }
 0x143   : > { %v2866_v23 = vpop.f32.mrb[19].mxu0  ;;  %v2868_v24 = vpop.f32.mrb[19].mxu1 }
 0x148   : > { %v2870_v25 = vpop.f32.mrb[20].mxu0  ;;  %v2872_v26 = vpop.f32.mrb[20].mxu1 }
 0x149   : > { %3007 = vst [vmem:[#allocation3_spill] sm:$0xff] %v2872_v26  ;;  %v2874_v27 = vpop.f32.mrb[21].mxu0  ;;  %v2876_v28 = vpop.f32.mrb[21].mxu1 }
 0x14a   : > { %v2878_v29 = vpop.f32.mrb[22].mxu0  ;;  %v2880_v30 = vpop.f32.mrb[22].mxu1 }
 0x14b   : > { %3008 = vst [vmem:[#allocation4_spill] sm:$0xff] %v2878_v29  ;;  %3009 = vst [vmem:[#allocation5_spill] sm:$0xff] %v2880_v30  ;;  %v2882_v31 = vpop.f32.mrb[23].mxu0  ;;  %v2884_v32 = vpop.f32.mrb[23].mxu1 }
 0x150   : > { %v2315_v33 = vpop.f32.mrb[24].mxu0  ;;  %v2367_v34 = vpop.f32.mrb[24].mxu1 }
 0x151   : > { %v1644_v35 = vmax.f32 %v1229_v51, %v2315_v33  ;;  %v2888_v36 = vpop.f32.mrb[25].mxu0  ;;  %v2890_v37 = vpop.f32.mrb[25].mxu1 }
 0x152   : > { %v2316_v38 = vpop.f32.mrb[26].mxu0  ;;  %v2368_v39 = vpop.f32.mrb[26].mxu1 }
 0x153   : > { %v1645_v40 = vmax.f32 %v1644_v35, %v1437_v52  ;;  %v1647_v41 = vmax.f32 %v1232_v55, %v2316_v38  ;;  %v2892_v42 = vpop.f32.mrb[27].mxu0  ;;  %v2894_v43 = vpop.f32.mrb[27].mxu1 }
 0x154   : > { %3010 = vst [vmem:[#allocation6_spill] sm:$0xff] %v2894_v43 }
 0x155   : > { %v1646_v45 = vmax.f32 %v1645_v40, %v2367_v34  ;;  %v1648_v46 = vmax.f32 %v1647_v41, %v1440_v56 }
 0x157   : > { %v1729_v47 = vadd.f32 %v2899_v44, %v1646_v45  ;;  %v1649_v48 = vmax.f32 %v1648_v46, %v2368_v39 }
 0x158   : > { %v2319_v51 = vpop.f32.mrb[28].mxu0  ;;  %v2371_v33 = vpop.f32.mrb[28].mxu1 }
 0x159   : > { %v1730_v52 = vadd.f32 %v2899_v44, %v1649_v48  ;;  %v1656_v55 = vmax.f32 %v2810_v59, %v2319_v51  ;;  %v1341_v35 = vpop.f32.mrb[29].mxu0  ;;  %v1549_v38 = vpop.f32.mrb[29].mxu1  ;;  %v1755_v26 = vmax.f32 %v1729_v47, 0.0 }
 0x15a   : > { %v1650_v30 = vmax.f32 %v2798_v49, %v1341_v35  ;;  %v2320_v43 = vpop.f32.mrb[30].mxu0  ;;  %v2372_v29 = vpop.f32.mrb[30].mxu1 }
 0x15b   : > { %v1756_v34 = vmax.f32 %v1730_v52, 0.0  ;;  %v1657_v56 = vmax.f32 %v1656_v55, %v2812_v60  ;;  %v1659_v40 = vmax.f32 %v2818_v63, %v2320_v43  ;;  %v1344_v39 = vpop.f32.mrb[31].mxu0  ;;  %v1552_v41 = vpop.f32.mrb[31].mxu1 }
 0x15c   : > { %v1651_v59 = vmax.f32 %v1650_v30, %v2800_v50  ;;  %v1653_v49 = vmax.f32 %v2802_v53, %v1344_v39 }
 0x15d   : > { %v2148_v45 = vpack.c.bf16 %v1756_v34, %v1755_v26  ;;  %v1658_v46 = vmax.f32 %v1657_v56, %v2371_v33  ;;  %v1660_v47 = vmax.f32 %v1659_v40, %v2820_v0 }
 0x15e   : > { %v1652_v48 = vmax.f32 %v1651_v59, %v1549_v38  ;;  %v1654_v60 = vmax.f32 %v1653_v49, %v2804_v54 }
 0x15f   : > { %2149 = vst [vmem:[%s2910_s22] sm:$0xff] %v2148_v45   ;;  %v1733_v63 = vadd.f32 %v2899_v44, %v1658_v46  ;;  %v1661_v43 = vmax.f32 %v1660_v47, %v2372_v29 }
 0x160   : > { %v1731_v51 = vadd.f32 %v2899_v44, %v1652_v48  ;;  %v1655_v52 = vmax.f32 %v1654_v60, %v1552_v41  ;;  %v2323_v55 = vpop.f32.mrb[32].mxu0  ;;  %v2375_v35 = vpop.f32.mrb[32].mxu1 }
 0x161   : > { %v1734_v50 = vadd.f32 %v2899_v44, %v1661_v43  ;;  %v1668_v53 = vmax.f32 %v2826_v3, %v2323_v55  ;;  %v1357_v26 = vpop.f32.mrb[33].mxu0  ;;  %v1565_v30 = vpop.f32.mrb[33].mxu1  ;;  %v1759_v34 = vmax.f32 %v1733_v63, 0.0 }
 0x162   : > { %v1732_v0 = vadd.f32 %v2899_v44, %v1655_v52  ;;  %v1662_v33 = vmax.f32 %v2806_v57, %v1357_v26  ;;  %v2324_v54 = vpop.f32.mrb[34].mxu0  ;;  %v2376_v38 = vpop.f32.mrb[34].mxu1  ;;  %v1757_v59 = vmax.f32 %v1731_v51, 0.0 }
 0x163   : > { %v1760_v29 = vmax.f32 %v1734_v50, 0.0  ;;  %v1669_v56 = vmax.f32 %v1668_v53, %v2828_v4  ;;  %v1671_v40 = vmax.f32 %v2834_v7, %v2324_v54  ;;  %v1360_v39 = vpop.f32.mrb[35].mxu0  ;;  %v1568_v41 = vpop.f32.mrb[35].mxu1 }
 0x164   : > { %v1758_v3 = vmax.f32 %v1732_v0, 0.0  ;;  %v1663_v49 = vmax.f32 %v1662_v33, %v2808_v58  ;;  %v1665_v45 = vmax.f32 %v2814_v61, %v1360_v39 }
 0x165   : > { %v2158_v46 = vpack.c.bf16 %v1760_v29, %v1759_v34  ;;  %v1670_v57 = vmax.f32 %v1669_v56, %v2375_v35  ;;  %v1672_v47 = vmax.f32 %v1671_v40, %v2836_v8 }
 0x166   : > { %v2153_v48 = vpack.c.bf16 %v1758_v3, %v1757_v59  ;;  %v1664_v60 = vmax.f32 %v1663_v49, %v1565_v30  ;;  %v1666_v63 = vmax.f32 %v1665_v45, %v2816_v62 }
 0x167   : > { %2211 = vst [vmem:[%s2910_s22 + $0x10] sm:$0xff] %v2158_v46   ;;  %v1737_v4 = vadd.f32 %v2899_v44, %v1670_v57  ;;  %v1673_v7 = vmax.f32 %v1672_v47, %v2376_v38 }
 0x168   : > { %2210 = vst [vmem:[%s2910_s22 + $0x8] sm:$0xff] %v2153_v48   ;;  %v1735_v43 = vadd.f32 %v2899_v44, %v1664_v60  ;;  %v1667_v51 = vmax.f32 %v1666_v63, %v1568_v41  ;;  %v2327_v52 = vpop.f32.mrb[36].mxu0  ;;  %v2379_v58 = vpop.f32.mrb[36].mxu1 }
 0x169   : > { %v1738_v61 = vadd.f32 %v2899_v44, %v1673_v7  ;;  %v1680_v55 = vmax.f32 %v2842_v11, %v2327_v52  ;;  %v1373_v35 = vpop.f32.mrb[37].mxu0  ;;  %v1581_v8 = vpop.f32.mrb[37].mxu1  ;;  %v1763_v30 = vmax.f32 %v1737_v4, 0.0 }
 0x16a   : > { %v1736_v50 = vadd.f32 %v2899_v44, %v1667_v51  ;;  %v1674_v62 = vmax.f32 %v2822_v1, %v1373_v35  ;;  %v2328_v53 = vpop.f32.mrb[38].mxu0  ;;  %v2380_v26 = vpop.f32.mrb[38].mxu1  ;;  %v1761_v29 = vmax.f32 %v1735_v43, 0.0 }
 0x16b   : > { %v1764_v0 = vmax.f32 %v1738_v61, 0.0  ;;  %v1681_v33 = vmax.f32 %v1680_v55, %v2844_v12  ;;  %v1683_v54 = vmax.f32 %v2850_v15, %v2328_v53  ;;  %v1376_v38 = vpop.f32.mrb[39].mxu0  ;;  %v1584_v34 = vpop.f32.mrb[39].mxu1 }
 0x16c   : > { %v1762_v11 = vmax.f32 %v1736_v50, 0.0  ;;  %v1675_v56 = vmax.f32 %v1674_v62, %v2824_v2  ;;  %v1677_v40 = vmax.f32 %v2830_v5, %v1376_v38 }
 0x16d   : > { %v2168_v39 = vpack.c.bf16 %v1764_v0, %v1763_v30  ;;  %v1682_v1 = vmax.f32 %v1681_v33, %v2379_v58  ;;  %v1684_v41 = vmax.f32 %v1683_v54, %v2852_v16 }
 0x16e   : > { %v2163_v59 = vpack.c.bf16 %v1762_v11, %v1761_v29  ;;  %v1676_v3 = vmax.f32 %v1675_v56, %v1581_v8  ;;  %v1678_v49 = vmax.f32 %v1677_v40, %v2832_v6 }
 0x16f   : > { %2213 = vst [vmem:[%s2910_s22 + $0x20] sm:$0xff] %v2168_v39   ;;  %v1741_v12 = vadd.f32 %v2899_v44, %v1682_v1  ;;  %v1685_v15 = vmax.f32 %v1684_v41, %v2380_v26 }
 0x170   : > { %2212 = vst [vmem:[%s2910_s22 + $0x18] sm:$0xff] %v2163_v59   ;;  %v1739_v45 = vadd.f32 %v2899_v44, %v1676_v3  ;;  %v1679_v46 = vmax.f32 %v1678_v49, %v1584_v34  ;;  %v2331_v57 = vpop.f32.mrb[40].mxu0  ;;  %v2383_v2 = vpop.f32.mrb[40].mxu1 }
 0x171   : > { %v1742_v5 = vadd.f32 %v2899_v44, %v1685_v15  ;;  %v1692_v47 = vmax.f32 %v2858_v19, %v2331_v57  ;;  %v1389_v48 = vpop.f32.mrb[41].mxu0  ;;  %v1597_v16 = vpop.f32.mrb[41].mxu1  ;;  %v1767_v7 = vmax.f32 %v1741_v12, 0.0 }
 0x172   : > { %v1740_v60 = vadd.f32 %v2899_v44, %v1679_v46  ;;  %v1686_v6 = vmax.f32 %v2838_v9, %v1389_v48  ;;  %v2332_v63 = vpop.f32.mrb[42].mxu0  ;;  %v2384_v4 = vpop.f32.mrb[42].mxu1  ;;  %v1765_v55 = vmax.f32 %v1739_v45, 0.0 }
 0x173   : > { %v1768_v43 = vmax.f32 %v1742_v5, 0.0  ;;  %v1693_v51 = vmax.f32 %v1692_v47, %v2860_v20  ;;  %v1695_v52 = vmax.f32 %v2866_v23, %v2332_v63  ;;  %v1392_v58 = vpop.f32.mrb[43].mxu0  ;;  %v1600_v61 = vpop.f32.mrb[43].mxu1 }
 0x174   : > { %v1766_v19 = vmax.f32 %v1740_v60, 0.0  ;;  %v1687_v35 = vmax.f32 %v1686_v6, %v2840_v10  ;;  %v1689_v8 = vmax.f32 %v2846_v13, %v1392_v58 }
 0x175   : > { %v2178_v50 = vpack.c.bf16 %v1768_v43, %v1767_v7  ;;  %v1694_v9 = vmax.f32 %v1693_v51, %v2383_v2  ;;  %v1696_v62 = vmax.f32 %v1695_v52, %v2868_v24 }
 0x176   : > { %v2173_v53 = vpack.c.bf16 %v1766_v19, %v1765_v55  ;;  %v1688_v26 = vmax.f32 %v1687_v35, %v1597_v16  ;;  %v1690_v30 = vmax.f32 %v1689_v8, %v2848_v14  ;;  %v3011_v35 = vld [vmem:[#allocation3_spill] sm:$0xff] }
 0x177   : > { %2215 = vst [vmem:[%s2910_s22 + $0x30] sm:$0xff] %v2178_v50   ;;  %v1745_v20 = vadd.f32 %v2899_v44, %v1694_v9  ;;  %v1697_v23 = vmax.f32 %v1696_v62, %v2384_v4  ;;  %v3012_v50 = vld [vmem:[#allocation4_spill] sm:$0xff] }
 0x178   : > { %2214 = vst [vmem:[%s2910_s22 + $0x28] sm:$0xff] %v2173_v53   ;;  %v1743_v0 = vadd.f32 %v2899_v44, %v1688_v26  ;;  %v1691_v33 = vmax.f32 %v1690_v30, %v1600_v61  ;;  %v2335_v54 = vpop.f32.mrb[44].mxu0  ;;  %v2387_v10 = vpop.f32.mrb[44].mxu1  ;;  %v3013_v53 = vld [vmem:[#allocation6_spill] sm:$0xff] }
 0x179   : > { %v1746_v13 = vadd.f32 %v2899_v44, %v1697_v23  ;;  %v1704_v38 = vmax.f32 %v2874_v27, %v2335_v54  ;;  %v1405_v34 = vpop.f32.mrb[45].mxu0  ;;  %v1613_v24 = vpop.f32.mrb[45].mxu1  ;;  %v1771_v40 = vmax.f32 %v1745_v20, 0.0  ;;  %v3014_v23 = vld [vmem:[#allocation5_spill] sm:$0xff] }
 0x17a   : > { %v1744_v29 = vadd.f32 %v2899_v44, %v1691_v33  ;;  %v1698_v14 = vmax.f32 %v2854_v17, %v1405_v34  ;;  %v2336_v11 = vpop.f32.mrb[46].mxu0  ;;  %v2388_v56 = vpop.f32.mrb[46].mxu1  ;;  %v1769_v49 = vmax.f32 %v1743_v0, 0.0 }
 0x17b   : > { %v1772_v39 = vmax.f32 %v1746_v13, 0.0  ;;  %v1705_v1 = vmax.f32 %v1704_v38, %v2876_v28  ;;  %v1707_v41 = vmax.f32 %v2882_v31, %v2336_v11  ;;  %v1408_v59 = vpop.f32.mrb[47].mxu0  ;;  %v1616_v3 = vpop.f32.mrb[47].mxu1 }
 0x17c   : > { %v1770_v27 = vmax.f32 %v1744_v29, 0.0  ;;  %v1699_v12 = vmax.f32 %v1698_v14, %v2856_v18  ;;  %v1701_v15 = vmax.f32 %v2862_v21, %v1408_v59 }
 0x17d   : > { %v2188_v45 = vpack.c.bf16 %v1772_v39, %v1771_v40  ;;  %v1706_v17 = vmax.f32 %v1705_v1, %v2387_v10  ;;  %v1708_v46 = vmax.f32 %v1707_v41, %v2884_v32 }
 0x17e   : > { %v2183_v57 = vpack.c.bf16 %v1770_v27, %v1769_v49  ;;  %v1700_v2 = vmax.f32 %v1699_v12, %v1613_v24  ;;  %v1702_v5 = vmax.f32 %v1701_v15, %v2864_v22 }
 0x17f   : > { %2217 = vst [vmem:[%s2910_s22 + $0x40] sm:$0xff] %v2188_v45   ;;  %v1749_v28 = vadd.f32 %v2899_v44, %v1706_v17  ;;  %v1709_v31 = vmax.f32 %v1708_v46, %v2388_v56 }
 0x180   : > { %2216 = vst [vmem:[%s2910_s22 + $0x38] sm:$0xff] %v2183_v57   ;;  %v1747_v47 = vadd.f32 %v2899_v44, %v1700_v2  ;;  %v1703_v48 = vmax.f32 %v1702_v5, %v1616_v3  ;;  %v2339_v16 = vpop.f32.mrb[48].mxu0  ;;  %v2391_v18 = vpop.f32.mrb[48].mxu1 }
 0x181   : > { %v1750_v21 = vadd.f32 %v2899_v44, %v1709_v31  ;;  %v1716_v60 = vmax.f32 %v2888_v36, %v2339_v16  ;;  %v1421_v6 = vpop.f32.mrb[49].mxu0  ;;  %v1629_v32 = vpop.f32.mrb[49].mxu1  ;;  %v1775_v43 = vmax.f32 %v1749_v28, 0.0 }
 0x182   : > { %v1748_v63 = vadd.f32 %v2899_v44, %v1703_v48  ;;  %v1710_v22 = vmax.f32 %v2870_v25, %v1421_v6  ;;  %v2340_v4 = vpop.f32.mrb[50].mxu0  ;;  %v2392_v7 = vpop.f32.mrb[50].mxu1  ;;  %v1773_v19 = vmax.f32 %v1747_v47, 0.0 }
 0x183   : > { %v1776_v51 = vmax.f32 %v1750_v21, 0.0  ;;  %v1717_v52 = vmax.f32 %v1716_v60, %v2890_v37  ;;  %v1719_v58 = vmax.f32 %v2892_v42, %v2340_v4  ;;  %v1424_v61 = vpop.f32.mrb[51].mxu0  ;;  %v1632_v55 = vpop.f32.mrb[51].mxu1 }
 0x184   : > { %v1774_v36 = vmax.f32 %v1748_v63, 0.0  ;;  %v1711_v8 = vmax.f32 %v1710_v22, %v3011_v35  ;;  %v1713_v9 = vmax.f32 %v3012_v50, %v1424_v61 }
 0x185   : > { %v2198_v62 = vpack.c.bf16 %v1776_v51, %v1775_v43  ;;  %v1718_v25 = vmax.f32 %v1717_v52, %v2391_v18  ;;  %v1720_v26 = vmax.f32 %v1719_v58, %v3013_v53 }
 0x186   : > { %v2193_v30 = vpack.c.bf16 %v1774_v36, %v1773_v19  ;;  %v1712_v20 = vmax.f32 %v1711_v8, %v1629_v32  ;;  %v1714_v37 = vmax.f32 %v1713_v9, %v3014_v23 }
 0x187   : > { %2219 = vst [vmem:[%s2910_s22 + $0x50] sm:$0xff] %v2198_v62   ;;  %v1753_v42 = vadd.f32 %v2899_v44, %v1718_v25  ;;  %v1721_v0 = vmax.f32 %v1720_v26, %v2392_v7 }
 0x188   : > { %2218 = vst [vmem:[%s2910_s22 + $0x48] sm:$0xff] %v2193_v30   ;;  %v1751_v33 = vadd.f32 %v2899_v44, %v1712_v20  ;;  %v1715_v54 = vmax.f32 %v1714_v37, %v1632_v55 }
 0x189   : > { %v1754_v10 = vadd.f32 %v2899_v44, %v1721_v0  ;;  %v1779_v38 = vmax.f32 %v1753_v42, 0.0 }
 0x18a   : > { %v1752_v13 = vadd.f32 %v2899_v44, %v1715_v54  ;;  %v1777_v24 = vmax.f32 %v1751_v33, 0.0 }
 0x18b   : > { %v1780_v34 = vmax.f32 %v1754_v10, 0.0 }
 0x18c   : > { %v1778_v29 = vmax.f32 %v1752_v13, 0.0 }
 0x18d   : > { %v2208_v14 = vpack.c.bf16 %v1780_v34, %v1779_v38 }
 0x18e   : > { %v2203_v11 = vpack.c.bf16 %v1778_v29, %v1777_v24 }
 0x18f   : > { %2221 = vst [vmem:[%s2910_s22 + $0x60] sm:$0xff] %v2208_v14  }
 0x190   : > { %2220 = vst [vmem:[%s2910_s22 + $0x58] sm:$0xff] %v2203_v11  }
 0x191 PF: > { %p10_p9 = scmp.ge.s32.totalorder %s2549_s16, 4   ;;  %s3015_s12 = smov %s2505_s13 }
 0x192   : > { %s3016_s13 = smov %s2558_s19  ;;  %s3017_s14 = smov %s2549_s16 }
 0x193   :  { %12 = sbr.rel (!%p10_p9) target bundleno = 2 (0x2), region = 108 }

// kernel: net_forward.4
= control target key start
LH: loop header
LB: loop body
LE: loop exit
PB: predicated region body
PF: predicated region fallthrough
CT: control target
= control target key end

     0   :  { %s863_s12 = smov 0   ;;  %s865_s13 = smov 0   ;;  %s992_s0 = inlined_call_operand.vmem [shape: bf16[4,64,150], index: 0, kind: input, shape index: {}]   ;;  %s993_s1 = inlined_call_operand.vmem [shape: bf16[150,128], index: 1, kind: input, shape index: {}]   ;;  %s994_s2 = inlined_call_operand.vmem [shape: f32[1,128], index: 2, kind: input, shape index: {}]   ;;  %s995_s3 = inlined_call_operand.vmem [shape: bf16[64,128], index: 3, kind: output, shape index: {}]  }
   0x1   :  { %s867_s14 = smov 0  }
   0x2 LB: > { %s669_s15 = sadd.s32 4294967295, %s840_s14   ;;  %s880_s16 = sadd.s32 1, %s840_s14   ;;  %s840_s14 = sphi %s867_s14, %s998_s14   ;;  %s836_s13 = sphi %s865_s13, %s997_s13   ;;  %s832_s12 = sphi %s863_s12, %s996_s12  }
   0x3   : > { %s17_s17 = ssub.s32 %s840_s14, %s880_s16  ;;  %s20_s18 = sadd.s32 1, %s836_s13 }
   0x4   : > { %p18_p0 = scmp.eq.s32.totalorder %s17_s17, 0  ;;  %p27_p1 = scmp.ne.s32.totalorder %s836_s13, %s832_s12 }
   0x5   : > { %p28_p2 = scmp.eq.s32.totalorder %s840_s14, 0  ;;  %p672_p4 = scmp.ge.s32.totalorder %s840_s14, 2 }
   0x6   : > { %s889_s19 = scalar_select %p18_p0, %s836_s13, %s20_s18  }
   0x7   : > { %p29_p3 = por %p28_p2, %p27_p1  ;;  %127 = sbr.rel (%p672_p4) target bundleno = 26 (0x1a), region = 24 }
   0xe   : > { %130 = sbr.rel (!%p29_p3) target bundleno = 26 (0x1a), region = 28  ;;  %s132_s20 = sand.u32 (%p29_p3), 1, %s836_s13  }
   0xf   : > { %s723_s21 = sshll.u32 (%p29_p3), %s840_s14, 5  ;;  %s673_s22 = sshll.u32 (%p29_p3), %s132_s20, 7 }
  0x10   : > { %s897_s25 = scalar_lea.vmem (%p29_p3), %s992_s0, %s723_s21  ;;  %s134_s26 = scalar_lea.vmem (%p29_p3), [#allocation2], %s673_s22 }
  0x11   : > { %v196_v0 = vld [vmem:[%s897_s25] sm:$0xff] (%p29_p3)  ;;  %v198_v1 = vld [vmem:[%s897_s25 + $0x8] sm:$0xff] (%p29_p3)  ;;  %v200_v2 = vld [vmem:[%s897_s25 + $0x10] sm:$0xff] (%p29_p3) }
  0x12   : > { %197 = vst [vmem:[%s134_s26] sm:$0xff] (%p29_p3), %v196_v0  ;;  %199 = vst [vmem:[%s134_s26 + $0x8] sm:$0xff] (%p29_p3), %v198_v1  ;;  %v202_v3 = vld [vmem:[%s897_s25 + $0x18] sm:$0xff] (%p29_p3)  ;;  %v204_v4 = vld [vmem:[%s897_s25 + $0x40] sm:$0xff] (%p29_p3) }
  0x13   : > { %201 = vst [vmem:[%s134_s26 + $0x10] sm:$0xff] (%p29_p3), %v200_v2  ;;  %v206_v5 = vld [vmem:[%s897_s25 + $0x48] sm:$0xff] (%p29_p3)  ;;  %203 = vst [vmem:[%s134_s26 + $0x18] sm:$0xff] (%p29_p3), %v202_v3  ;;  %v208_v6 = vld [vmem:[%s897_s25 + $0x50] sm:$0xff] (%p29_p3) }
  0x14   : > { %205 = vst [vmem:[%s134_s26 + $0x20] sm:$0xff] (%p29_p3), %v204_v4  ;;  %207 = vst [vmem:[%s134_s26 + $0x28] sm:$0xff] (%p29_p3), %v206_v5  ;;  %v210_v7 = vld [vmem:[%s897_s25 + $0x58] sm:$0xff] (%p29_p3)  ;;  %v212_v8 = vld [vmem:[%s897_s25 + $0x80] sm:$0xff] (%p29_p3) }
  0x15   : > { %209 = vst [vmem:[%s134_s26 + $0x30] sm:$0xff] %v208_v6  ;;  %211 = vst [vmem:[%s134_s26 + $0x38] sm:$0xff] %v210_v7  ;;  %v214_v9 = vld [vmem:[%s897_s25 + $0x88] sm:$0xff]  ;;  %v216_v10 = vld [vmem:[%s897_s25 + $0x90] sm:$0xff] }
  0x16   : > { %213 = vst [vmem:[%s134_s26 + $0x40] sm:$0xff] %v212_v8  ;;  %v218_v11 = vld [vmem:[%s897_s25 + $0x98] sm:$0xff]  ;;  %215 = vst [vmem:[%s134_s26 + $0x48] sm:$0xff] %v214_v9  ;;  %v220_v12 = vld [vmem:[%s897_s25 + $0xc0] sm:$0xff] }
  0x17   : > { %217 = vst [vmem:[%s134_s26 + $0x50] sm:$0xff] %v216_v10  ;;  %219 = vst [vmem:[%s134_s26 + $0x58] sm:$0xff] %v218_v11  ;;  %v222_v13 = vld [vmem:[%s897_s25 + $0xc8] sm:$0xff]  ;;  %v224_v14 = vld [vmem:[%s897_s25 + $0xd0] sm:$0xff] }
  0x18   : > { %221 = vst [vmem:[%s134_s26 + $0x60] sm:$0xff] %v220_v12  ;;  %223 = vst [vmem:[%s134_s26 + $0x68] sm:$0xff] %v222_v13  ;;  %v226_v15 = vld [vmem:[%s897_s25 + $0xd8] sm:$0xff] }
  0x19   : > { %225 = vst [vmem:[%s134_s26 + $0x70] sm:$0xff] %v224_v14  ;;  %227 = vst [vmem:[%s134_s26 + $0x78] sm:$0xff] %v226_v15 }
  0x1a PF: > { %p677_p5 = scmp.ge.s32.totalorder %s840_s14, 1  ;;  %p232_p6 = scmp.lt.s32.totalorder %s840_s14, 3 }
  0x1c   : > { %p233_p7 = pnand %p677_p5, %p232_p6 }
  0x1d   : > { %v784_v16 = vld [vmem:[%s993_s1] sm:$0xff] (!%p233_p7)   ;;  %v842_v17 = vmov (!%p233_p7), 0   ;;  %v785_v18 = vld [vmem:[%s993_s1 + $0x8] sm:$0xff] (!%p233_p7)   ;;  %s239_s4 = sand.u32 (!%p233_p7), 1, %s832_s12   ;;  %v786_v19 = vld [vmem:[%s993_s1 + $0x10] sm:$0xff] (!%p233_p7)   ;;  %vm434_vm0 = vcmask (!%p233_p7), 179200  }
  0x1e   : > { %236 = sbr.rel (%p233_p7) target bundleno = 321 (0x141), region = 66  ;;  %463 = vmatprep.subr.bf16.mxu0 (!%p233_p7), %v842_v17  ;;  %739 = vmatprep.subr.bf16.mxu1 (!%p233_p7), %v842_v17  ;;  %s678_s5 = sshll.u32 (!%p233_p7), %s239_s4, 7  ;;  %v787_v20 = vld [vmem:[%s993_s1 + $0x18] sm:$0xff] (!%p233_p7)   ;;  %v788_v23 = vld [vmem:[%s993_s1 + $0x20] sm:$0xff] (!%p233_p7)   ;;  %v789_v24 = vld [vmem:[%s993_s1 + $0x28] sm:$0xff] (!%p233_p7)   ;;  %vm459_vm1 = vcmask (!%p233_p7), 1042432  }
  0x1f   : > { %464 = vmatpush1.bf16.msra.mxu0 (!%p233_p7), %v784_v16  ;;  %749 = vmatpush1.bf16.msra.mxu1 (!%p233_p7), %v784_v16  ;;  %s927_s8 = scalar_lea.vmem (!%p233_p7), [#allocation2], %s678_s5  ;;  %v790_v25 = vld [vmem:[%s993_s1 + $0x30] sm:$0xff] (!%p233_p7)   ;;  %v791_v26 = vld [vmem:[%s993_s1 + $0x38] sm:$0xff] (!%p233_p7)   ;;  %v792_v27 = vld [vmem:[%s993_s1 + $0x40] sm:$0xff] (!%p233_p7)   ;;  %s679_s28 = sshll.u32 (!%p233_p7), %s669_s15, 2 }
  0x20   : > { %465 = vmatprep.subr.bf16.mxu0 (!%p233_p7), %v842_v17  ;;  %740 = vmatprep.subr.bf16.mxu1 (!%p233_p7), %v842_v17  ;;  %v796_v21 = vld [vmem:[%s927_s8 + $0x4] ss:$8 sps:$4 sm:$0xff] (!%p233_p7)   ;;  %v793_v28 = vld [vmem:[%s993_s1 + $0x48] ss:$0 sps:$4 sm:$0x77] (!%p233_p7)   ;;  %p264_p8 = scmp.lt.s32.totalorder (!%p233_p7), %s679_s28, 7 }
  0x21   : > { %707 = vmatprep.mubr.msk.bf16.mxu0 (!%p233_p7), %vm434_vm0, %v796_v21  ;;  %v799_v22 = vld [vmem:[%s927_s8 + $0x44] ss:$8 sps:$4 sm:$0xff] (!%p233_p7)   ;;  %v461_v29 = vsel (!%p233_p7), %vm459_vm1, %v793_v28, 0  ;;  %v794_v30 = vld [vmem:[%s927_s8] ss:$8 sps:$4 sm:$0xff] (!%p233_p7)  }
  0x22   : > { %711 = vmatprep.mubr.msk.bf16.mxu1 (!%p233_p7), %vm434_vm0, %v799_v22  ;;  %v797_v31 = vld [vmem:[%s927_s8 + $0x40] ss:$8 sps:$4 sm:$0xff] (!%p233_p7)   ;;  %v800_v32 = vld [vmem:[%s927_s8 + $0x14] ss:$8 sps:$4 sm:$0xff] (!%p233_p7)   ;;  %v802_v34 = vld [vmem:[%s927_s8 + $0x10] ss:$8 sps:$4 sm:$0xff] (!%p233_p7)  }
  0x23   : > { %466 = vmatpush1.bf16.msra.mxu0 (!%p233_p7), %v785_v18  ;;  %750 = vmatpush1.bf16.msra.mxu1 (!%p233_p7), %v785_v18  ;;  %v803_v33 = vld [vmem:[%s927_s8 + $0x54] ss:$8 sps:$4 sm:$0xff] (!%p233_p7)   ;;  %v805_v35 = vld [vmem:[%s927_s8 + $0x50] ss:$8 sps:$4 sm:$0xff] (!%p233_p7)   ;;  %v806_v36 = vld [vmem:[%s927_s8 + $0x24] ss:$8 sps:$4 sm:$0xff] (!%p233_p7)  }
  0x24   : > { %467 = vmatprep.subr.bf16.mxu0 (!%p233_p7), %v842_v17  ;;  %741 = vmatprep.subr.bf16.mxu1 (!%p233_p7), %v842_v17  ;;  %v809_v37 = vld [vmem:[%s927_s8 + $0x64] ss:$8 sps:$4 sm:$0xff] (!%p233_p7)   ;;  %v808_v38 = vld [vmem:[%s927_s8 + $0x20] ss:$8 sps:$4 sm:$0xff] (!%p233_p7)   ;;  %v812_v40 = vld [vmem:[%s927_s8 + $0x34] ss:$8 sps:$4 sm:$0xff] (!%p233_p7)  }
  0x25   : > { %v811_v39 = vld [vmem:[%s927_s8 + $0x60] ss:$8 sps:$4 sm:$0xff]   ;;  %v815_v41 = vld [vmem:[%s927_s8 + $0x74] ss:$8 sps:$4 sm:$0xff]   ;;  %v814_v42 = vld [vmem:[%s927_s8 + $0x30] ss:$8 sps:$4 sm:$0xff]  }
  0x26   : > { %v817_v43 = vld [vmem:[%s927_s8 + $0x70] ss:$8 sps:$4 sm:$0xff]   ;;  %v715_v7 = vld [vmem:[%s994_s2] ss:$0 sm:$0xff]  ;;  %s1000_s28 = smov (!%p264_p8, %s679_s28), 7 }
  0x27   : > { %468 = vmatpush1.bf16.msra.mxu0 %v786_v19  ;;  %751 = vmatpush1.bf16.msra.mxu1 %v786_v19  ;;  %s680_s14 = sshll.u32 %s1000_s28, 2 }
  0x28   : > { %469 = vmatprep.subr.bf16.mxu0 %v842_v17  ;;  %742 = vmatprep.subr.bf16.mxu1 %v842_v17  ;;  %s267_s5 = scalar_lea.vmem %s995_s3, %s680_s14 }
  0x2b   : > { %470 = vmatpush1.bf16.msra.mxu0 %v787_v20  ;;  %752 = vmatpush1.bf16.msra.mxu1 %v787_v20 }
  0x2c   : > { %471 = vmatprep.subr.bf16.mxu0 %v842_v17  ;;  %743 = vmatprep.subr.bf16.mxu1 %v842_v17 }
  0x2f   : > { %472 = vmatpush1.bf16.msra.mxu0 %v788_v23  ;;  %753 = vmatpush1.bf16.msra.mxu1 %v788_v23 }
  0x30   : > { %473 = vmatprep.subr.bf16.mxu0 %v842_v17  ;;  %744 = vmatprep.subr.bf16.mxu1 %v842_v17 }
  0x33   : > { %474 = vmatpush1.bf16.msra.mxu0 %v789_v24  ;;  %754 = vmatpush1.bf16.msra.mxu1 %v789_v24 }
  0x34   : > { %475 = vmatprep.subr.bf16.mxu0 %v842_v17  ;;  %745 = vmatprep.subr.bf16.mxu1 %v842_v17 }
  0x37   : > { %476 = vmatpush1.bf16.msra.mxu0 %v790_v25  ;;  %755 = vmatpush1.bf16.msra.mxu1 %v790_v25 }
  0x38   : > { %477 = vmatprep.subr.bf16.mxu0 %v842_v17  ;;  %746 = vmatprep.subr.bf16.mxu1 %v842_v17 }
  0x3b   : > { %478 = vmatpush1.bf16.msra.mxu0 %v791_v26  ;;  %756 = vmatpush1.bf16.msra.mxu1 %v791_v26 }
  0x3c   : > { %479 = vmatprep.subr.bf16.mxu0 %v842_v17  ;;  %747 = vmatprep.subr.bf16.mxu1 %v842_v17 }
  0x3f   : > { %480 = vmatpush1.bf16.msra.mxu0 %v792_v27  ;;  %757 = vmatpush1.bf16.msra.mxu1 %v792_v27 }
  0x40   : > { %481 = vmatprep.subr.bf16.mxu0 %v842_v17  ;;  %748 = vmatprep.subr.bf16.mxu1 %v842_v17 }
  0x43   : > { %482 = vmatpush1.bf16.msra.mxu0 %v461_v29  ;;  %758 = vmatpush1.bf16.msra.mxu1 %v461_v29 }
  0x46   : > { %496 = vmatmul.mubr.bf16.vlgmr.msra.gmra.mrb[0].mxu0 %v794_v30  ;;  %528 = vmatmul.mubr.bf16.vlgmr.msra.gmra.mrb[0].mxu1 %v797_v31 }
  0x47   : > { %708 = vmatprep.mubr.msk.bf16.mxu0 %vm434_vm0, %v800_v32  ;;  %712 = vmatprep.mubr.msk.bf16.mxu1 %vm434_vm0, %v803_v33 }
  0x4e   : > { %504 = vmatmul.mubr.bf16.gmra.mrb[4].mxu0 %v802_v34  ;;  %536 = vmatmul.mubr.bf16.gmra.mrb[4].mxu1 %v805_v35 }
  0x4f   : > { %709 = vmatprep.mubr.msk.bf16.mxu0 %vm434_vm0, %v806_v36  ;;  %713 = vmatprep.mubr.msk.bf16.mxu1 %vm434_vm0, %v809_v37 }
  0x56   : > { %512 = vmatmul.mubr.bf16.gmra.mrb[8].mxu0 %v808_v38  ;;  %544 = vmatmul.mubr.bf16.gmra.mrb[8].mxu1 %v811_v39 }
  0x57   : > { %710 = vmatprep.mubr.msk.bf16.mxu0 %vm434_vm0, %v812_v40  ;;  %714 = vmatprep.mubr.msk.bf16.mxu1 %vm434_vm0, %v815_v41 }
  0x5e   : > { %520 = vmatmul.mubr.bf16.gmra.mrb[12].mxu0 %v814_v42  ;;  %552 = vmatmul.mubr.bf16.gmra.mrb[12].mxu1 %v817_v43 }
 0x119   : > { %v497_v44 = vpop.f32.mrb[0].mxu0  ;;  %v529_v45 = vpop.f32.mrb[0].mxu1 }
 0x11a   : > { %v499_v46 = vpop.f32.mrb[1].mxu0  ;;  %v531_v47 = vpop.f32.mrb[1].mxu1 }
 0x11b   : > { %v500_v48 = vpop.f32.mrb[2].mxu0  ;;  %v532_v49 = vpop.f32.mrb[2].mxu1 }
 0x11c   : > { %v502_v50 = vpop.f32.mrb[3].mxu0  ;;  %v534_v51 = vpop.f32.mrb[3].mxu1 }
 0x121   : > { %v505_v52 = vpop.f32.mrb[4].mxu0  ;;  %v537_v53 = vpop.f32.mrb[4].mxu1 }
 0x122   : > { %v507_v54 = vpop.f32.mrb[5].mxu0  ;;  %v539_v55 = vpop.f32.mrb[5].mxu1 }
 0x123   : > { %v508_v56 = vpop.f32.mrb[6].mxu0  ;;  %v540_v57 = vpop.f32.mrb[6].mxu1 }
 0x124   : > { %v510_v58 = vpop.f32.mrb[7].mxu0  ;;  %v542_v59 = vpop.f32.mrb[7].mxu1 }
 0x129   : > { %v513_v60 = vpop.f32.mrb[8].mxu0  ;;  %v545_v61 = vpop.f32.mrb[8].mxu1 }
 0x12a   : > { %v560_v62 = vmax.f32 %v497_v44, %v513_v60  ;;  %v515_v63 = vpop.f32.mrb[9].mxu0  ;;  %v547_v0 = vpop.f32.mrb[9].mxu1 }
 0x12b   : > { %v516_v1 = vpop.f32.mrb[10].mxu0  ;;  %v548_v2 = vpop.f32.mrb[10].mxu1 }
 0x12c   : > { %v561_v3 = vmax.f32 %v560_v62, %v529_v45  ;;  %v563_v4 = vmax.f32 %v500_v48, %v516_v1  ;;  %v518_v5 = vpop.f32.mrb[11].mxu0  ;;  %v550_v6 = vpop.f32.mrb[11].mxu1 }
 0x12e   : > { %v562_v8 = vmax.f32 %v561_v3, %v545_v61  ;;  %v564_v9 = vmax.f32 %v563_v4, %v532_v49 }
 0x130   : > { %v579_v10 = vadd.f32 %v715_v7, %v562_v8  ;;  %v565_v11 = vmax.f32 %v564_v9, %v548_v2 }
 0x131   : > { %v521_v12 = vpop.f32.mrb[12].mxu0  ;;  %v553_v13 = vpop.f32.mrb[12].mxu1 }
 0x132   : > { %v580_v14 = vadd.f32 %v715_v7, %v565_v11  ;;  %v566_v15 = vmax.f32 %v505_v52, %v521_v12  ;;  %v523_v16 = vpop.f32.mrb[13].mxu0  ;;  %v555_v17 = vpop.f32.mrb[13].mxu1  ;;  %v583_v20 = vmax.f32 %v579_v10, 0.0 }
 0x133   : > { %v524_v18 = vpop.f32.mrb[14].mxu0  ;;  %v556_v19 = vpop.f32.mrb[14].mxu1 }
 0x134   : > { %v584_v21 = vmax.f32 %v580_v14, 0.0  ;;  %v567_v22 = vmax.f32 %v566_v15, %v537_v53  ;;  %v569_v23 = vmax.f32 %v508_v56, %v524_v18  ;;  %v526_v24 = vpop.f32.mrb[15].mxu0  ;;  %v558_v25 = vpop.f32.mrb[15].mxu1 }
 0x136   : > { %v731_v26 = vpack.c.bf16 %v584_v21, %v583_v20  ;;  %v568_v27 = vmax.f32 %v567_v22, %v553_v13  ;;  %v570_v28 = vmax.f32 %v569_v23, %v540_v57 }
 0x138   : > { %732 = vst [vmem:[%s267_s5] sm:$0xff] %v731_v26   ;;  %v581_v29 = vadd.f32 %v715_v7, %v568_v27  ;;  %v571_v30 = vmax.f32 %v570_v28, %v556_v19 }
 0x13a   : > { %v582_v31 = vadd.f32 %v715_v7, %v571_v30  ;;  %v585_v32 = vmax.f32 %v581_v29, 0.0 }
 0x13c   : > { %v586_v33 = vmax.f32 %v582_v31, 0.0 }
 0x13e   : > { %v736_v34 = vpack.c.bf16 %v586_v33, %v585_v32 }
 0x140   : > { %738 = vst [vmem:[%s267_s5 + $0x8] sm:$0xff] %v736_v34  }
 0x141 PF: > { %p10_p9 = scmp.ge.s32.totalorder %s880_s16, 4   ;;  %s996_s12 = smov %s836_s13 }
 0x142   : > { %s997_s13 = smov %s889_s19  ;;  %s998_s14 = smov %s880_s16 }
 0x143   :  { %12 = sbr.rel (!%p10_p9) target bundleno = 2 (0x2), region = 105 }

// kernel: net_forward.5
= control target key start
LH: loop header
LB: loop body
LE: loop exit
PB: predicated region body
PF: predicated region fallthrough
CT: control target
= control target key end

     0   :  { %v758_v0 = vmov 0   ;;  %vm257_vm0 = vcmask 130048   ;;  %v759_v30 = vmov 0.0   ;;  %vm760_vm1 = vmmov 0   ;;  %s978_s1 = inlined_call_operand.vmem [shape: bf16[400,128], index: 1, kind: input, shape index: {}]   ;;  %s979_s0 = inlined_call_operand.vmem [shape: bf16[16,400], index: 0, kind: input, shape index: {}]   ;;  %s980_s3 = inlined_call_operand.vmem [shape: bf16[128,128], index: 3, kind: input, shape index: {}]   ;;  %s981_s5 = inlined_call_operand.vmem [shape: bf16[128,128], index: 5, kind: input, shape index: {}]   ;;  %s982_s2 = inlined_call_operand.vmem [shape: f32[1,128], index: 2, kind: input, shape index: {}]   ;;  %s983_s4 = inlined_call_operand.vmem [shape: f32[1,128], index: 4, kind: input, shape index: {}]   ;;  %s984_s6 = inlined_call_operand.vmem [shape: f32[1,128], index: 6, kind: input, shape index: {}]   ;;  %s985_s7 = inlined_call_operand.vmem [shape: f32[16,128], index: 7, kind: output, shape index: {}]  }
   0x1   :  { %302 = vmatprep.subr.bf16.mxu1 %v758_v0  ;;  %v711_v1 = vld [vmem:[%s978_s1 + $0x40] sm:$0xff]   ;;  %v714_v4 = vld [vmem:[%s978_s1 + $0x48] sm:$0xff]   ;;  %v717_v7 = vld [vmem:[%s978_s1 + $0x50] sm:$0xff]  }
   0x2   :  { %v712_v2 = vld [vmem:[%s978_s1 + $0x80] sm:$0xff]   ;;  %628 = vmatprep.subr.bf16.mxu0 %v711_v1  ;;  %v715_v5 = vld [vmem:[%s978_s1 + $0x88] sm:$0xff]   ;;  %v718_v8 = vld [vmem:[%s978_s1 + $0x90] sm:$0xff]  }
   0x3   :  { %v713_v3 = vld [vmem:[%s978_s1] sm:$0xff]   ;;  %303 = vmatpush1.bf16.msra.mxu1 %v712_v2  ;;  %v716_v6 = vld [vmem:[%s978_s1 + $0x8] sm:$0xff]   ;;  %v719_v9 = vld [vmem:[%s978_s1 + $0x10] sm:$0xff]  }
   0x4   :  { %629 = vmatpush3.bf16.msra.mxu0 %v713_v3  ;;  %304 = vmatprep.subr.bf16.mxu1 %v758_v0  ;;  %v720_v10 = vld [vmem:[%s978_s1 + $0x58] sm:$0xff]   ;;  %v723_v13 = vld [vmem:[%s978_s1 + $0x60] sm:$0xff]   ;;  %v726_v16 = vld [vmem:[%s978_s1 + $0x68] sm:$0xff]  }
   0x5   :  { %630 = vmatprep.subr.bf16.mxu0 %v714_v4  ;;  %v721_v11 = vld [vmem:[%s978_s1 + $0x98] sm:$0xff]   ;;  %v724_v14 = vld [vmem:[%s978_s1 + $0xa0] sm:$0xff]   ;;  %v727_v17 = vld [vmem:[%s978_s1 + $0xa8] sm:$0xff]  }
   0x6   :  { %v722_v12 = vld [vmem:[%s978_s1 + $0x18] sm:$0xff]   ;;  %v725_v15 = vld [vmem:[%s978_s1 + $0x20] sm:$0xff]   ;;  %v728_v18 = vld [vmem:[%s978_s1 + $0x28] sm:$0xff]  }
   0x7   :  { %305 = vmatpush1.bf16.msra.mxu1 %v715_v5  ;;  %v729_v19 = vld [vmem:[%s978_s1 + $0x70] sm:$0xff]   ;;  %v732_v22 = vld [vmem:[%s978_s1 + $0x78] sm:$0xff]   ;;  %v738_v28 = vld [vmem:[%s978_s1 + $0xc0] sm:$0xff]  }
   0x8   :  { %631 = vmatpush3.bf16.msra.mxu0 %v716_v6  ;;  %306 = vmatprep.subr.bf16.mxu1 %v758_v0  ;;  %v730_v20 = vld [vmem:[%s978_s1 + $0xb0] sm:$0xff]   ;;  %v733_v24 = vld [vmem:[%s978_s1 + $0xb8] sm:$0xff]   ;;  %v742_v29 = vld [vmem:[%s980_s3] sm:$0xff]  }
   0x9   :  { %632 = vmatprep.subr.bf16.mxu0 %v717_v7  ;;  %v731_v21 = vld [vmem:[%s978_s1 + $0x30] sm:$0xff]   ;;  %v741_v25 = vld [vmem:[%s979_s0 + $0xc] ss:$16 sps:$4 sm:$0xff]   ;;  %v739_v31 = vld [vmem:[%s979_s0 + $0x8] ss:$16 sps:$4 sm:$0xff]  }
   0xa   :  { %v737_v23 = vld [vmem:[%s979_s0 + $0x4] ss:$16 sps:$4 sm:$0xff]   ;;  %v734_v26 = vld [vmem:[%s978_s1 + $0x38] sm:$0xff]   ;;  %609 = vmatprep.mubr.msk.bf16.mxu1 %vm257_vm0, %v741_v25  ;;  %v735_v27 = vld [vmem:[%s979_s0] ss:$16 sps:$4 sm:$0xff]  }
   0xb   :  { %307 = vmatpush1.bf16.msra.mxu1 %v718_v8  ;;  %293 = vmatprep.mubr.bf16.mxu0 %v737_v23  ;;  %v743_v32 = vld [vmem:[%s980_s3 + $0x8] sm:$0xff]   ;;  %v744_v33 = vld [vmem:[%s980_s3 + $0x10] sm:$0xff]   ;;  %v745_v34 = vld [vmem:[%s980_s3 + $0x18] sm:$0xff]  }
   0xc   :  { %633 = vmatpush3.bf16.msra.mxu0 %v719_v9  ;;  %308 = vmatprep.subr.bf16.mxu1 %v758_v0  ;;  %v746_v35 = vld [vmem:[%s980_s3 + $0x20] sm:$0xff]   ;;  %v747_v36 = vld [vmem:[%s980_s3 + $0x28] sm:$0xff]   ;;  %v748_v37 = vld [vmem:[%s980_s3 + $0x30] sm:$0xff]  }
   0xd   :  { %634 = vmatprep.subr.bf16.mxu0 %v720_v10  ;;  %v749_v38 = vld [vmem:[%s980_s3 + $0x38] sm:$0xff]   ;;  %v750_v39 = vld [vmem:[%s981_s5] sm:$0xff]   ;;  %v751_v40 = vld [vmem:[%s981_s5 + $0x8] sm:$0xff]  }
   0xe   :  { %v752_v41 = vld [vmem:[%s981_s5 + $0x10] sm:$0xff]   ;;  %v753_v42 = vld [vmem:[%s981_s5 + $0x18] sm:$0xff]   ;;  %v754_v43 = vld [vmem:[%s981_s5 + $0x20] sm:$0xff]  }
   0xf   :  { %309 = vmatpush1.bf16.msra.mxu1 %v721_v11  ;;  %v755_v44 = vld [vmem:[%s981_s5 + $0x28] sm:$0xff]   ;;  %v579_v47 = vld [vmem:[%s982_s2] ss:$0 sm:$0xff]  ;;  %v756_v63 = vld [vmem:[%s981_s5 + $0x30] sm:$0xff]  }
  0x10   :  { %635 = vmatpush3.bf16.msra.mxu0 %v722_v12  ;;  %310 = vmatprep.subr.bf16.mxu1 %v758_v0  ;;  %v610_v1 = vld [vmem:[%s983_s4] ss:$0 sm:$0xff] }
  0x11   :  { %636 = vmatprep.subr.bf16.mxu0 %v723_v13  ;;  %v619_v11 = vld [vmem:[%s984_s6] ss:$0 sm:$0xff] }
  0x13   :  { %311 = vmatpush1.bf16.msra.mxu1 %v724_v14 }
  0x14   :  { %637 = vmatpush3.bf16.msra.mxu0 %v725_v15  ;;  %312 = vmatprep.subr.bf16.mxu1 %v758_v0 }
  0x15   :  { %638 = vmatprep.subr.bf16.mxu0 %v726_v16 }
  0x17   :  { %313 = vmatpush1.bf16.msra.mxu1 %v727_v17 }
  0x18   :  { %639 = vmatpush3.bf16.msra.mxu0 %v728_v18  ;;  %314 = vmatprep.subr.bf16.mxu1 %v758_v0 }
  0x19   :  { %640 = vmatprep.subr.bf16.mxu0 %v729_v19 }
  0x1b   :  { %315 = vmatpush1.bf16.msra.mxu1 %v730_v20 }
  0x1c   :  { %641 = vmatpush3.bf16.msra.mxu0 %v731_v21  ;;  %316 = vmatprep.subr.bf16.mxu1 %v758_v0 }
  0x1d   :  { %642 = vmatprep.subr.bf16.mxu0 %v732_v22 }
  0x1f   :  { %317 = vmatpush1.bf16.msra.mxu1 %v733_v24 }
  0x20   :  { %643 = vmatpush3.bf16.msra.mxu0 %v734_v26  ;;  %318 = vmatprep.subr.bf16.mxu1 %v758_v0  ;;  %v757_v0 = vld [vmem:[%s981_s5 + $0x38] sm:$0xff]  }
  0x21   :  { %668 = vmatprep.subr.bf16.mxu0 %v759_v30 }
  0x23   :  { %294 = vmatmul.mubr.bf16.vlgmr.msra.gmra.mrb[0].mxu0 %v735_v27  ;;  %319 = vmatpush1.bf16.msra.mxu1 %v738_v28 }
  0x24   :  { %669 = vmatpush3.bf16.msra.mxu0 %v742_v29  ;;  %688 = vmatprep.subr.bf16.mxu1 %v759_v30 }
  0x25   :  { %670 = vmatprep.subr.bf16.mxu0 %v759_v30  ;;  %684 = vmatprep.mubr.msk.bf16.mxu0 %vm760_vm1, %v759_v30 }
  0x26   :  { %335 = vmatmul.mubr.bf16.vlgmr.msra.gmra.mrb[0].mxu1 %v739_v31 }
  0x27   :  { %704 = vmatprep.mubr.msk.bf16.mxu1 %vm760_vm1, %v759_v30  ;;  %689 = vmatpush3.bf16.msra.mxu1 %v750_v39 }
  0x28   :  { %671 = vmatpush3.bf16.msra.mxu0 %v743_v32  ;;  %690 = vmatprep.subr.bf16.mxu1 %v759_v30 }
  0x29   :  { %672 = vmatprep.subr.bf16.mxu0 %v759_v30 }
  0x2b   :  { %691 = vmatpush3.bf16.msra.mxu1 %v751_v40 }
  0x2c   :  { %673 = vmatpush3.bf16.msra.mxu0 %v744_v33  ;;  %692 = vmatprep.subr.bf16.mxu1 %v759_v30 }
  0x2d   :  { %674 = vmatprep.subr.bf16.mxu0 %v759_v30 }
  0x2f   :  { %693 = vmatpush3.bf16.msra.mxu1 %v752_v41 }
  0x30   :  { %675 = vmatpush3.bf16.msra.mxu0 %v745_v34  ;;  %694 = vmatprep.subr.bf16.mxu1 %v759_v30 }
  0x31   :  { %676 = vmatprep.subr.bf16.mxu0 %v759_v30 }
  0x33   :  { %695 = vmatpush3.bf16.msra.mxu1 %v753_v42 }
  0x34   :  { %677 = vmatpush3.bf16.msra.mxu0 %v746_v35  ;;  %696 = vmatprep.subr.bf16.mxu1 %v759_v30 }
  0x35   :  { %678 = vmatprep.subr.bf16.mxu0 %v759_v30 }
  0x37   :  { %697 = vmatpush3.bf16.msra.mxu1 %v754_v43 }
  0x38   :  { %679 = vmatpush3.bf16.msra.mxu0 %v747_v36  ;;  %698 = vmatprep.subr.bf16.mxu1 %v759_v30 }
  0x39   :  { %680 = vmatprep.subr.bf16.mxu0 %v759_v30 }
  0x3b   :  { %699 = vmatpush3.bf16.msra.mxu1 %v755_v44 }
  0x3c   :  { %681 = vmatpush3.bf16.msra.mxu0 %v748_v37  ;;  %700 = vmatprep.subr.bf16.mxu1 %v759_v30 }
  0x3d   :  { %682 = vmatprep.subr.bf16.mxu0 %v759_v30 }
  0x3f   :  { %701 = vmatpush3.bf16.msra.mxu1 %v756_v63 }
  0x40   :  { %683 = vmatpush3.bf16.msra.mxu0 %v749_v38  ;;  %702 = vmatprep.subr.bf16.mxu1 %v759_v30 }
  0x43   :  { %703 = vmatpush3.bf16.msra.mxu1 %v757_v0 }
  0xf6   :  { %v644_v45 = vpop.f32.mrb[0].mxu0 }
  0xf7   :  { %v645_v46 = vpop.f32.mrb[1].mxu0 }
  0xf8   :  { %v646_v48 = vadd.f32 %v645_v46, %v644_v45  ;;  %v647_v49 = vpop.f32.mrb[2].mxu0 }
  0xf9   :  { %v648_v50 = vpop.f32.mrb[3].mxu0  ;;  %v336_v51 = vpop.f32.mrb[0].mxu1 }
  0xfa   :  { %v649_v52 = vadd.f32 %v648_v50, %v647_v49  ;;  %v296_v53 = vadd.f32 %v646_v48, %v579_v47  ;;  %v338_v54 = vpop.f32.mrb[1].mxu1 }
  0xfb   :  { %v339_v55 = vpop.f32.mrb[2].mxu1 }
  0xfc   :  { %v337_v56 = vadd.f32 %v336_v51, %v296_v53  ;;  %v299_v57 = vadd.f32 %v649_v52, %v579_v47  ;;  %v341_v58 = vpop.f32.mrb[3].mxu1 }
  0xfe   :  { %v340_v59 = vadd.f32 %v339_v55, %v299_v57  ;;  %v343_v60 = vmax.f32 %v337_v56, 0.0 }
 0x100   :  { %v344_v61 = vmax.f32 %v340_v59, 0.0 }
 0x102   :  { %v345_v62 = vpack.c.bf16 %v344_v61, %v343_v60 }
 0x104   :  { %685 = vmatmul.mubr.bf16.vlgmr.msra.gmra.mrb[4].mxu0 %v345_v62 }
 0x1d7   :  { %v451_v2 = vpop.f32.mrb[4].mxu0 }
 0x1d8   :  { %v452_v3 = vadd.f32 %v610_v1, %v451_v2  ;;  %v686_v4 = vpop.f32.mrb[5].mxu0 }
 0x1d9   :  { %v454_v5 = vpop.f32.mrb[6].mxu0 }
 0x1da   :  { %v455_v6 = vadd.f32 %v610_v1, %v454_v5  ;;  %v687_v7 = vpop.f32.mrb[7].mxu0  ;;  %v458_v8 = vmax.f32 %v452_v3, 0.0 }
 0x1dc   :  { %v459_v9 = vmax.f32 %v455_v6, 0.0 }
 0x1de   :  { %v460_v10 = vpack.c.bf16 %v459_v9, %v458_v8 }
 0x1e0   :  { %705 = vmatmul.mubr.bf16.vlgmr.msra.gmra.mrb[4].mxu1 %v460_v10 }
 0x2b3   :  { %v566_v12 = vpop.f32.mrb[4].mxu1 }
 0x2b4   :  { %v567_v13 = vadd.f32 %v619_v11, %v566_v12  ;;  %v706_v14 = vpop.f32.mrb[5].mxu1 }
 0x2b5   :  { %v569_v15 = vpop.f32.mrb[6].mxu1 }
 0x2b6   :  { %573 = vst [vmem:[%s985_s7] sm:$0xff] %v567_v13  ;;  %v570_v16 = vadd.f32 %v619_v11, %v569_v15  ;;  %v707_v17 = vpop.f32.mrb[7].mxu1 }
 0x2b8   :  { %574 = vst [vmem:[%s985_s7 + $0x8] sm:$0xff] %v570_v16 }

</bundles_post_ra>
